<compile_context>
chip_gen: v6e
topology: v6e:2x2x1
jax: 0.10.0
libtpu: 0.0.40
codegen_flags: <defaults>
</compile_context>

<pallas_src>
import math
import numpy as np
import jax
import jax.numpy as jnp
from jax.experimental import pallas as pl
from jax.experimental.pallas import tpu as pltpu

_OW = 128  # lane-dense output row width (>= max images packed per grid step)


def _gauss_1d_np(size: int, sigma: float) -> np.ndarray:
    # Matches _fspecial_gauss_1d (float32 math, normalized).
    coords = np.arange(size, dtype=np.float32) - (size // 2)
    g = np.exp(-(coords ** 2) / (2.0 * np.float32(sigma) ** 2)).astype(np.float32)
    return (g / g.sum()).astype(np.float32)


def _band_matrix_np(n: int, g: np.ndarray, win_size: int) -> np.ndarray:
    # M[i, j] = g[j - i + half] for |i - j| <= half, else 0.
    # (M @ x) reproduces the zero-padded "SAME" 1-D convolution along H.
    half = win_size // 2
    i = np.arange(n)[:, None]
    j = np.arange(n)[None, :]
    d = j - i + half
    valid = (d >= 0) & (d < win_size)
    return np.where(valid, g[np.clip(d, 0, win_size - 1)], 0.0).astype(np.float32)


def _wpass_weights_np(W: int, L5: int, g: np.ndarray, win_size: int) -> np.ndarray:
    # Per-tap lane weights with the SAME-zero-pad validity mask folded in:
    # wt[tap, l] = g[tap] if 0 <= (l % W) + (tap - half) < W else 0.
    half = win_size // 2
    w_idx = np.arange(L5) % W
    wt = np.zeros((win_size, L5), np.float32)
    for tap in range(win_size):
        d = tap - half
        valid = (w_idx + d >= 0) & (w_idx + d < W)
        wt[tap] = np.where(valid, g[tap], 0.0)
    return wt


def _vmem_estimate(H, L, itemsize, win_size, do_hblur, do_wblur, use_selector):
    est = 2 * 2 * H * L * itemsize          # x, y input blocks (double-buffered)
    est += 3 * H * 5 * L * 4                # r / t / u f32 working slabs
    est += 4 * H * L * 4                    # pointwise temporaries headroom
    if do_hblur:
        est += 2 * H * H * 4                # banded H-blur matrix
    if do_wblur:
        est += 2 * win_size * 5 * L * 4     # folded W-pass weight table
    if use_selector:
        est += 2 * L * _OW * 4              # per-image mean selector
    est += 4 * _OW * 4
    return est


def _choose_bt(B, H, W, itemsize, win_size, vmem_budget):
    """Number of images packed per grid step (lane dim L = Bt * W)."""
    if W >= 128:
        return 1                                   # already lane-dense
    bt_min = -(-128 // W)                          # smallest Bt with L >= 128
    bt_hi = max(bt_min, 1024 // W)                 # lane-width target <= ~1024
    if B >= 2 * bt_min:
        bt = max(bt_min, min(bt_hi, B // 2))       # keep >= 2 steps (v7x megacore)
    else:
        bt = bt_min                                # tiny batch: lane density wins
    # Prefer 128-aligned L (unmasked vreg moves) when it neither blows the lane
    # budget nor collapses the batch grid to a single step.
    align = 128 // math.gcd(W, 128)
    bt_aligned = -(-bt // align) * align
    if bt_aligned * W <= 2048 and (B < 2 * bt_min or -(-B // bt_aligned) >= 2):
        bt = bt_aligned
    bt = min(bt, _OW)                              # selector output is 128 lanes
    # Shrink until the working set fits the VMEM budget.
    while bt > 1 and _vmem_estimate(H, bt * W, itemsize, win_size,
                                    True, True, True) > vmem_budget:
        bt = max(1, bt // 2)
    return bt


def _make_kernel(H, W, L, win_size, C1, C2, *, do_hblur, do_wblur, use_selector):
    half = win_size // 2
    inv_hw = 1.0 / (H * W)
    L5 = 5 * L

    def kernel(*refs):
        it = iter(refs)
        x_ref = next(it)
        y_ref = next(it)
        bh_ref = next(it) if do_hblur else None
        wt_ref = next(it) if do_wblur else None
        sel_ref = next(it) if use_selector else None
        out_ref = next(it)

        x = x_ref[0].astype(jnp.float32)            # (H, L): cast after block DMA
        y = y_ref[0].astype(jnp.float32)

        # Five blur operands side by side along lanes -> one (H, 5L) slab so the
        # H pass is a single wide MXU matmul.
        r = jnp.concatenate([x, y, x * x, y * y, x * y], axis=-1)

        # ---- H pass: banded Gaussian as one (H,H) @ (H,5L) MXU matmul ----
        if do_hblur:
            t = jnp.dot(bh_ref[...], r, preferred_element_type=jnp.float32)
        else:
            t = r   # reference skips smoothing along dims smaller than the window

        # ---- W pass: win_size shifted MACs on VPU/XLU; tap weight and the
        # SAME-zero-pad lane-validity mask are pre-folded into wt (2 ops/tap).
        if do_wblur:
            wt = wt_ref[...]                        # (win_size, 5L)
            u = jnp.zeros_like(t)
            for tap in range(win_size):
                d = tap - half
                shifted = t if d == 0 else pltpu.roll(t, shift=(-d) % L5, axis=1)
                u = u + shifted * wt[tap:tap + 1, :]
        else:
            u = t

        mu1 = u[:, 0 * L:1 * L]
        mu2 = u[:, 1 * L:2 * L]
        bxx = u[:, 2 * L:3 * L]
        byy = u[:, 3 * L:4 * L]
        bxy = u[:, 4 * L:5 * L]

        mu1_sq = mu1 * mu1
        mu2_sq = mu2 * mu2
        mu1_mu2 = mu1 * mu2
        sigma1_sq = bxx - mu1_sq
        sigma2_sq = byy - mu2_sq
        sigma12 = bxy - mu1_mu2

        # luminance * contrast * structure with C3 = C2/2 folds to the classic
        # SSIM formula; one reciprocal instead of two divides, no sqrt/NaN.
        num = (2.0 * mu1_mu2 + C1) * (2.0 * sigma12 + C2)
        den = (mu1_sq + mu2_sq + C1) * (sigma1_sq + sigma2_sq + C2)
        ssim_map = num * pl.reciprocal(den)         # (H, L)

        if use_selector:
            # Per-image spatial mean via one-hot selector (1/(H*W) folded in)
            # -> lane-dense (1, 128) row per independent grid step.
            per_lane = jnp.dot(ssim_map, sel_ref[...],
                               preferred_element_type=jnp.float32)   # (H, 128)
            out_ref[...] = jnp.sum(per_lane, axis=0, keepdims=True)
        else:
            # Bt == 1: plain lane+sublane reduce; cheaper than the selector
            # matmul and frees the (L, 128) selector from VMEM.
            m = jnp.sum(ssim_map) * inv_hw
            out_ref[...] = jnp.full((1, _OW), m, dtype=jnp.float32)

    return kernel


def ssim_pallas(X, Y, *, data_range=255.0, win_size=11, win_sigma=1.5,
                K=(0.01, 0.03), strictly_positive_ssim=False, size_average=True):
    assert X.shape == Y.shape, "Input images should have the same dimensions."
    assert win_size % 2 == 1, "Window size should be odd."
    N, C, H, W = X.shape
    B = N * C

    # Integer-valued images (0..data_range<=256) are exact in bf16: halve the
    # X/Y DMA bytes.  Floats keep their HBM dtype (cast to f32 inside kernel).
    if not jnp.issubdtype(X.dtype, jnp.floating):
        X = X.astype(jnp.bfloat16 if data_range <= 256 else jnp.float32)
    if not jnp.issubdtype(Y.dtype, jnp.floating):
        Y = Y.astype(jnp.bfloat16 if data_range <= 256 else jnp.float32)
    itemsize = max(X.dtype.itemsize, Y.dtype.itemsize)

    # VMEM budget from the actual hardware (fallback: v7x's 64 MiB).
    vmem_cap = 64 * 1024 * 1024
    try:
        vmem_cap = int(pltpu.get_tpu_info().vmem_capacity_bytes)
    except Exception:
        pass
    vmem_budget = int(0.75 * vmem_cap)

    Bt = _choose_bt(B, H, W, itemsize, win_size, vmem_budget)
    nb = -(-B // Bt)
    Bpad = nb * Bt
    L = Bt * W

    do_hblur = H >= win_size
    do_wblur = W >= win_size
    use_selector = Bt > 1

    def pack(a):
        a = a.reshape(B, H, W)
        if Bpad != B:
            a = jnp.pad(a, ((0, Bpad - B), (0, 0), (0, 0)))
        # (nb, Bt, H, W) -> (nb, H, Bt*W): images side by side along lanes.
        # No-op reshape when W >= 128 (Bt == 1).
        return a.reshape(nb, Bt, H, W).transpose(0, 2, 1, 3).reshape(nb, H, L)

    Xp, Yp = pack(X), pack(Y)

    gauss = _gauss_1d_np(win_size, win_sigma)
    K1, K2 = K
    C1 = float((K1 * data_range) ** 2)
    C2 = float((K2 * data_range) ** 2)
    # scales = (1,1,1) in _ssim_map -> pow(x, 1) is the identity, omitted.

    operands = [Xp, Yp]
    in_specs = [pl.BlockSpec((1, H, L), lambda b: (b, 0, 0)),
                pl.BlockSpec((1, H, L), lambda b: (b, 0, 0))]
    # Grid-invariant operands (constant index_map -> fetched once).
    if do_hblur:
        operands.append(jnp.asarray(_band_matrix_np(H, gauss, win_size)))
        in_specs.append(pl.BlockSpec((H, H), lambda b: (0, 0)))
    if do_wblur:
        operands.append(jnp.asarray(_wpass_weights_np(W, 5 * L, gauss, win_size)))
        in_specs.append(pl.BlockSpec((win_size, 5 * L), lambda b: (0, 0)))
    if use_selector:
        sel = np.zeros((L, _OW), np.float32)
        sel[np.arange(L), np.arange(L) // W] = 1.0 / (H * W)
        operands.append(jnp.asarray(sel))
        in_specs.append(pl.BlockSpec((L, _OW), lambda b: (0, 0)))

    kernel = _make_kernel(H, W, L, win_size, C1, C2,
                          do_hblur=do_hblur, do_wblur=do_wblur,
                          use_selector=use_selector)

    est = _vmem_estimate(H, L, itemsize, win_size, do_hblur, do_wblur, use_selector)
    vmem_limit = int(min(vmem_cap, max(32 * 1024 * 1024, int(1.4 * est))))

    out = pl.pallas_call(
        kernel,
        out_shape=jax.ShapeDtypeStruct((nb, _OW), jnp.float32),
        grid_spec=pltpu.PrefetchScalarGridSpec(
            num_scalar_prefetch=0,
            grid=(nb,),
            in_specs=in_specs,
            out_specs=pl.BlockSpec((1, _OW), lambda b: (b, 0)),
        ),
        compiler_params=pltpu.CompilerParams(
            dimension_semantics=("parallel",),      # independent steps -> megacore
            vmem_limit_bytes=vmem_limit),
    )(*operands)

    ssim_per_channel = out[:, :Bt].reshape(-1)[:B].reshape(N, C)
    if strictly_positive_ssim:
        ssim_per_channel = jax.nn.relu(ssim_per_channel)
    if size_average:
        return jnp.mean(ssim_per_channel)
    return jnp.mean(ssim_per_channel, axis=1)


class SSIM:
    """Pallas-backed equivalent of the PyTorch SSIM module (spatial_dims=2)."""

    def __init__(self, data_range=255.0, size_average=True, win_size=11,
                 win_sigma=1.5, channels=3, spatial_dims=2, K=(0.01, 0.03),
                 strictly_positive_ssim=False):
        assert spatial_dims == 2, "This Pallas implementation covers the 2-D case."
        assert win_size % 2 == 1, "Window size should be odd."
        self.data_range = data_range
        self.size_average = size_average
        self.win_size = win_size
        self.win_sigma = win_sigma
        self.channels = channels  # depthwise: same window repeated per channel
        self.K = K
        self.strictly_positive_ssim = strictly_positive_ssim

    def __call__(self, X, Y):
        return ssim_pallas(
            X, Y,
            data_range=self.data_range,
            win_size=self.win_size,
            win_sigma=self.win_sigma,
            K=self.K,
            strictly_positive_ssim=self.strictly_positive_ssim,
            size_average=self.size_average,
        )


if __name__ == "__main__":
    key = jax.random.PRNGKey(0)
    kx, ky = jax.random.split(key)
    N, Ch, H, W = 2, 3, 16, 16  # H, W >= win_size=11 so both blur passes run
    X = jax.random.uniform(kx, (N, Ch, H, W), dtype=jnp.float32) * 255.0
    Y = jax.random.uniform(ky, (N, Ch, H, W), dtype=jnp.float32) * 255.0

    model = SSIM(data_range=255.0, channels=Ch)
    result = model(X, Y)
    jax.block_until_ready(result)
    print("KERNEL_OK")
</pallas_src>

<mosaic_0001>
module attributes {stable_mosaic.version = 11 : i64} {
  func.func @kernel(%arg0: i32, %arg1: memref<1x16x128xf32, #tpu.memory_space<vmem>>, %arg2: memref<1x16x128xf32, #tpu.memory_space<vmem>>, %arg3: memref<16x16xf32, #tpu.memory_space<vmem>>, %arg4: memref<11x640xf32, #tpu.memory_space<vmem>>, %arg5: memref<128x128xf32, #tpu.memory_space<vmem>>, %arg6: memref<1x128xf32, #tpu.memory_space<vmem>>) attributes {dimension_semantics = [#tpu.dimension_semantics<parallel>], iteration_bounds = array<i64: 1>, scalar_prefetch = 0 : i64, scratch_operands = 0 : i64, tpu.core_type = #tpu.core_type<tc>, window_params = [{transform_indices = @transform_0, window_bounds = array<i64: 1, 16, 128>}, {transform_indices = @transform_1, window_bounds = array<i64: 1, 16, 128>}, {pipeline_mode = #tpu.pipeline_mode<synchronous>, transform_indices = @transform_2, window_bounds = array<i64: 16, 16>}, {pipeline_mode = #tpu.pipeline_mode<synchronous>, transform_indices = @transform_3, window_bounds = array<i64: 11, 640>}, {pipeline_mode = #tpu.pipeline_mode<synchronous>, transform_indices = @transform_4, window_bounds = array<i64: 128, 128>}, {transform_indices = @transform_5, window_bounds = array<i64: 1, 128>}]} {
    %c0 = arith.constant 0 : index
    %c0_0 = arith.constant 0 : index
    %c0_1 = arith.constant 0 : index
    %0 = vector.load %arg1[%c0, %c0_0, %c0_1] : memref<1x16x128xf32, #tpu.memory_space<vmem>>, vector<1x16x128xf32>
    %1 = vector.shape_cast %0 : vector<1x16x128xf32> to vector<16x128xf32>
    %c0_2 = arith.constant 0 : index
    %c0_3 = arith.constant 0 : index
    %c0_4 = arith.constant 0 : index
    %2 = vector.load %arg2[%c0_2, %c0_3, %c0_4] : memref<1x16x128xf32, #tpu.memory_space<vmem>>, vector<1x16x128xf32>
    %3 = vector.shape_cast %2 : vector<1x16x128xf32> to vector<16x128xf32>
    %4 = arith.mulf %1, %1 : vector<16x128xf32>
    %5 = arith.mulf %3, %3 : vector<16x128xf32>
    %6 = arith.mulf %1, %3 : vector<16x128xf32>
    %7 = tpu.concatenate %1, %3, %4, %5, %6 in 1 : vector<16x128xf32>, vector<16x128xf32>, vector<16x128xf32>, vector<16x128xf32>, vector<16x128xf32> -> vector<16x640xf32>
    %c0_5 = arith.constant 0 : index
    %c0_6 = arith.constant 0 : index
    %8 = vector.load %arg3[%c0_5, %c0_6] : memref<16x16xf32, #tpu.memory_space<vmem>>, vector<16x16xf32>
    %cst = arith.constant dense<0.000000e+00> : vector<16x640xf32>
    %9 = tpu.matmul %8, %7, %cst {dimension_numbers = #tpu.dot_dimension_numbers<[1], [0], [0], [1], [0, 0, 1, 1], [], []>} : vector<16x16xf32>, vector<16x640xf32>, vector<16x640xf32> -> vector<16x640xf32>
    %c0_7 = arith.constant 0 : index
    %c0_8 = arith.constant 0 : index
    %10 = vector.load %arg4[%c0_7, %c0_8] : memref<11x640xf32, #tpu.memory_space<vmem>>, vector<11x640xf32>
    %cst_9 = arith.constant 0.000000e+00 : f32
    %11 = vector.broadcast %cst_9 : f32 to vector<16x640xf32>
    %c5_i32 = arith.constant 5 : i32
    %12 = tpu.dynamic_rotate %9 by %c5_i32 dim 1 : vector<16x640xf32>, i32 -> vector<16x640xf32>
    %13 = vector.extract_strided_slice %10 {offsets = [0, 0], sizes = [1, 640], strides = [1, 1]} : vector<11x640xf32> to vector<1x640xf32>
    %14 = vector.broadcast %13 : vector<1x640xf32> to vector<16x640xf32>
    %15 = arith.mulf %12, %14 : vector<16x640xf32>
    %16 = arith.addf %11, %15 : vector<16x640xf32>
    %c4_i32 = arith.constant 4 : i32
    %17 = tpu.dynamic_rotate %9 by %c4_i32 dim 1 : vector<16x640xf32>, i32 -> vector<16x640xf32>
    %18 = vector.extract_strided_slice %10 {offsets = [1, 0], sizes = [1, 640], strides = [1, 1]} : vector<11x640xf32> to vector<1x640xf32>
    %19 = vector.broadcast %18 : vector<1x640xf32> to vector<16x640xf32>
    %20 = arith.mulf %17, %19 : vector<16x640xf32>
    %21 = arith.addf %16, %20 : vector<16x640xf32>
    %c3_i32 = arith.constant 3 : i32
    %22 = tpu.dynamic_rotate %9 by %c3_i32 dim 1 : vector<16x640xf32>, i32 -> vector<16x640xf32>
    %23 = vector.extract_strided_slice %10 {offsets = [2, 0], sizes = [1, 640], strides = [1, 1]} : vector<11x640xf32> to vector<1x640xf32>
    %24 = vector.broadcast %23 : vector<1x640xf32> to vector<16x640xf32>
    %25 = arith.mulf %22, %24 : vector<16x640xf32>
    %26 = arith.addf %21, %25 : vector<16x640xf32>
    %c2_i32 = arith.constant 2 : i32
    %27 = tpu.dynamic_rotate %9 by %c2_i32 dim 1 : vector<16x640xf32>, i32 -> vector<16x640xf32>
    %28 = vector.extract_strided_slice %10 {offsets = [3, 0], sizes = [1, 640], strides = [1, 1]} : vector<11x640xf32> to vector<1x640xf32>
    %29 = vector.broadcast %28 : vector<1x640xf32> to vector<16x640xf32>
    %30 = arith.mulf %27, %29 : vector<16x640xf32>
    %31 = arith.addf %26, %30 : vector<16x640xf32>
    %c1_i32 = arith.constant 1 : i32
    %32 = tpu.dynamic_rotate %9 by %c1_i32 dim 1 : vector<16x640xf32>, i32 -> vector<16x640xf32>
    %33 = vector.extract_strided_slice %10 {offsets = [4, 0], sizes = [1, 640], strides = [1, 1]} : vector<11x640xf32> to vector<1x640xf32>
    %34 = vector.broadcast %33 : vector<1x640xf32> to vector<16x640xf32>
    %35 = arith.mulf %32, %34 : vector<16x640xf32>
    %36 = arith.addf %31, %35 : vector<16x640xf32>
    %37 = vector.extract_strided_slice %10 {offsets = [5, 0], sizes = [1, 640], strides = [1, 1]} : vector<11x640xf32> to vector<1x640xf32>
    %38 = vector.broadcast %37 : vector<1x640xf32> to vector<16x640xf32>
    %39 = arith.mulf %9, %38 : vector<16x640xf32>
    %40 = arith.addf %36, %39 : vector<16x640xf32>
    %c639_i32 = arith.constant 639 : i32
    %41 = tpu.dynamic_rotate %9 by %c639_i32 dim 1 : vector<16x640xf32>, i32 -> vector<16x640xf32>
    %42 = vector.extract_strided_slice %10 {offsets = [6, 0], sizes = [1, 640], strides = [1, 1]} : vector<11x640xf32> to vector<1x640xf32>
    %43 = vector.broadcast %42 : vector<1x640xf32> to vector<16x640xf32>
    %44 = arith.mulf %41, %43 : vector<16x640xf32>
    %45 = arith.addf %40, %44 : vector<16x640xf32>
    %c638_i32 = arith.constant 638 : i32
    %46 = tpu.dynamic_rotate %9 by %c638_i32 dim 1 : vector<16x640xf32>, i32 -> vector<16x640xf32>
    %47 = vector.extract_strided_slice %10 {offsets = [7, 0], sizes = [1, 640], strides = [1, 1]} : vector<11x640xf32> to vector<1x640xf32>
    %48 = vector.broadcast %47 : vector<1x640xf32> to vector<16x640xf32>
    %49 = arith.mulf %46, %48 : vector<16x640xf32>
    %50 = arith.addf %45, %49 : vector<16x640xf32>
    %c637_i32 = arith.constant 637 : i32
    %51 = tpu.dynamic_rotate %9 by %c637_i32 dim 1 : vector<16x640xf32>, i32 -> vector<16x640xf32>
    %52 = vector.extract_strided_slice %10 {offsets = [8, 0], sizes = [1, 640], strides = [1, 1]} : vector<11x640xf32> to vector<1x640xf32>
    %53 = vector.broadcast %52 : vector<1x640xf32> to vector<16x640xf32>
    %54 = arith.mulf %51, %53 : vector<16x640xf32>
    %55 = arith.addf %50, %54 : vector<16x640xf32>
    %c636_i32 = arith.constant 636 : i32
    %56 = tpu.dynamic_rotate %9 by %c636_i32 dim 1 : vector<16x640xf32>, i32 -> vector<16x640xf32>
    %57 = vector.extract_strided_slice %10 {offsets = [9, 0], sizes = [1, 640], strides = [1, 1]} : vector<11x640xf32> to vector<1x640xf32>
    %58 = vector.broadcast %57 : vector<1x640xf32> to vector<16x640xf32>
    %59 = arith.mulf %56, %58 : vector<16x640xf32>
    %60 = arith.addf %55, %59 : vector<16x640xf32>
    %c635_i32 = arith.constant 635 : i32
    %61 = tpu.dynamic_rotate %9 by %c635_i32 dim 1 : vector<16x640xf32>, i32 -> vector<16x640xf32>
    %62 = vector.extract_strided_slice %10 {offsets = [10, 0], sizes = [1, 640], strides = [1, 1]} : vector<11x640xf32> to vector<1x640xf32>
    %63 = vector.broadcast %62 : vector<1x640xf32> to vector<16x640xf32>
    %64 = arith.mulf %61, %63 : vector<16x640xf32>
    %65 = arith.addf %60, %64 : vector<16x640xf32>
    %66 = vector.extract_strided_slice %65 {offsets = [0, 0], sizes = [16, 128], strides = [1, 1]} : vector<16x640xf32> to vector<16x128xf32>
    %67 = vector.extract_strided_slice %65 {offsets = [0, 128], sizes = [16, 128], strides = [1, 1]} : vector<16x640xf32> to vector<16x128xf32>
    %68 = vector.extract_strided_slice %65 {offsets = [0, 256], sizes = [16, 128], strides = [1, 1]} : vector<16x640xf32> to vector<16x128xf32>
    %69 = vector.extract_strided_slice %65 {offsets = [0, 384], sizes = [16, 128], strides = [1, 1]} : vector<16x640xf32> to vector<16x128xf32>
    %70 = vector.extract_strided_slice %65 {offsets = [0, 512], sizes = [16, 128], strides = [1, 1]} : vector<16x640xf32> to vector<16x128xf32>
    %71 = arith.mulf %66, %66 : vector<16x128xf32>
    %72 = arith.mulf %67, %67 : vector<16x128xf32>
    %73 = arith.mulf %66, %67 : vector<16x128xf32>
    %74 = arith.subf %68, %71 : vector<16x128xf32>
    %75 = arith.subf %69, %72 : vector<16x128xf32>
    %76 = arith.subf %70, %73 : vector<16x128xf32>
    %cst_10 = arith.constant 2.000000e+00 : f32
    %77 = vector.broadcast %cst_10 : f32 to vector<16x128xf32>
    %78 = arith.mulf %77, %73 : vector<16x128xf32>
    %cst_11 = arith.constant 6.502500e+00 : f32
    %79 = vector.broadcast %cst_11 : f32 to vector<16x128xf32>
    %80 = arith.addf %78, %79 : vector<16x128xf32>
    %cst_12 = arith.constant 2.000000e+00 : f32
    %81 = vector.broadcast %cst_12 : f32 to vector<16x128xf32>
    %82 = arith.mulf %81, %76 : vector<16x128xf32>
    %cst_13 = arith.constant 5.852250e+01 : f32
    %83 = vector.broadcast %cst_13 : f32 to vector<16x128xf32>
    %84 = arith.addf %82, %83 : vector<16x128xf32>
    %85 = arith.mulf %80, %84 : vector<16x128xf32>
    %86 = arith.addf %71, %72 : vector<16x128xf32>
    %cst_14 = arith.constant 6.502500e+00 : f32
    %87 = vector.broadcast %cst_14 : f32 to vector<16x128xf32>
    %88 = arith.addf %86, %87 : vector<16x128xf32>
    %89 = arith.addf %74, %75 : vector<16x128xf32>
    %cst_15 = arith.constant 5.852250e+01 : f32
    %90 = vector.broadcast %cst_15 : f32 to vector<16x128xf32>
    %91 = arith.addf %89, %90 : vector<16x128xf32>
    %92 = arith.mulf %88, %91 : vector<16x128xf32>
    %93 = tpu.reciprocal %92 : vector<16x128xf32> -> vector<16x128xf32>
    %94 = arith.mulf %85, %93 : vector<16x128xf32>
    %c0_16 = arith.constant 0 : index
    %c0_17 = arith.constant 0 : index
    %95 = vector.load %arg5[%c0_16, %c0_17] : memref<128x128xf32, #tpu.memory_space<vmem>>, vector<128x128xf32>
    %cst_18 = arith.constant dense<0.000000e+00> : vector<16x128xf32>
    %96 = tpu.matmul %94, %95, %cst_18 {dimension_numbers = #tpu.dot_dimension_numbers<[1], [0], [0], [1], [0, 0, 1, 1], [], []>} : vector<16x128xf32>, vector<128x128xf32>, vector<16x128xf32> -> vector<16x128xf32>
    %cst_19 = arith.constant dense<0.000000e+00> : vector<128xf32>
    %97 = vector.multi_reduction <add>, %96, %cst_19 [0] : vector<16x128xf32> to vector<128xf32>
    %98 = vector.shape_cast %97 : vector<128xf32> to vector<1x128xf32>
    %c0_20 = arith.constant 0 : index
    %c0_21 = arith.constant 0 : index
    %99 = vector.load %arg6[%c0_20, %c0_21] : memref<1x128xf32, #tpu.memory_space<vmem>>, vector<1x128xf32>
    tpu.vector_store %arg6[%c0_20, %c0_21], %98 {strides = array<i32>} : memref<1x128xf32, #tpu.memory_space<vmem>>, vector<1x128xf32>,
    return
  }
  func.func @transform_0(%arg0: i32) -> (i32, i32, i32) {
    %c0_i32 = arith.constant 0 : i32
    %c0_i32_0 = arith.constant 0 : i32
    %c0_i32_1 = arith.constant 0 : i32
    return %arg0, %c0_i32, %c0_i32_0 : i32, i32, i32
  }
  func.func @transform_1(%arg0: i32) -> (i32, i32, i32) {
    %c0_i32 = arith.constant 0 : i32
    %c0_i32_0 = arith.constant 0 : i32
    %c0_i32_1 = arith.constant 0 : i32
    return %arg0, %c0_i32, %c0_i32_0 : i32, i32, i32
  }
  func.func @transform_2(%arg0: i32) -> (i32, i32) {
    %c0_i32 = arith.constant 0 : i32
    %c0_i32_0 = arith.constant 0 : i32
    %c0_i32_1 = arith.constant 0 : i32
    return %c0_i32, %c0_i32_0 : i32, i32
  }
  func.func @transform_3(%arg0: i32) -> (i32, i32) {
    %c0_i32 = arith.constant 0 : i32
    %c0_i32_0 = arith.constant 0 : i32
    %c0_i32_1 = arith.constant 0 : i32
    return %c0_i32, %c0_i32_0 : i32, i32
  }
  func.func @transform_4(%arg0: i32) -> (i32, i32) {
    %c0_i32 = arith.constant 0 : i32
    %c0_i32_0 = arith.constant 0 : i32
    %c0_i32_1 = arith.constant 0 : i32
    return %c0_i32, %c0_i32_0 : i32, i32
  }
  func.func @transform_5(%arg0: i32) -> (i32, i32) {
    %c0_i32 = arith.constant 0 : i32
    %c0_i32_0 = arith.constant 0 : i32
    return %arg0, %c0_i32 : i32, i32
  }
}

</mosaic_0001>

<bundles_post_ra>
// kernel: tpu_custom_call.1
= control target key start
LH: loop header
LB: loop body
LE: loop exit
PB: predicated region body
PF: predicated region fallthrough
CT: control target
= control target key end

     0   :  { %10 = vsyncpa [#allocation3], 0  ;;  %s2638_s0 = inlined_call_operand.hbm [shape: f32[1,16,128], index: 0, kind: input, shape index: {}]   ;;  %s2639_s1 = inlined_call_operand.hbm [shape: f32[1,16,128], index: 1, kind: input, shape index: {}]   ;;  %s2640_s2 = inlined_call_operand.hbm [shape: f32[16,16], index: 2, kind: input, shape index: {}]   ;;  %s2641_s3 = inlined_call_operand.hbm [shape: f32[11,640], index: 3, kind: input, shape index: {}]   ;;  %s2642_s4 = inlined_call_operand.hbm [shape: f32[128,128], index: 4, kind: input, shape index: {}]   ;;  %s2643_s5 = inlined_call_operand.hbm [shape: f32[1,128], index: 5, kind: output, shape index: {}]  }
   0x1   :  { %11 = vsyncpa [#allocation6], 0 }
   0x2   :  { %12 = vsyncpa [#allocation9], 0 }
   0x3   :  { %13 = vsyncpa [#allocation4], 0  ;;  %s1474_s18 = smov [#allocation5]   ;;  %s1475_s20 = smov [#allocation8]  }
   0x4   :  { %s31_s19 = sshll.u32 %s1474_s18, 4  ;;  %s55_s21 = sshll.u32 %s1475_s20, 4  ;;  %s32_s19 = int_to_ptr.vmem [resolvable:$true] %s31_s19  ;;  %s56_s21 = int_to_ptr.vmem [resolvable:$true] %s55_s21 }
   0x5   :  { %s1354_s22 = scalar_lea.vmem %s32_s19, 256  ;;  %p1359_p1 = scmp.lt.s32.totalorder %s32_s19, %s32_s19 }
   0x6   :  { %p1355_p0 = scmp.ne.s32.totalorder %s32_s19, %s1354_s22  ;;  %p1360_p2 = scmp.lt.s32.totalorder %s1354_s22, %s1354_s22 }
   0x8   :  { %p1361_p3 = por %p1360_p2, %p1359_p1 }
   0xa   :  { %p1362_p4 = pnand %p1361_p3, %p1355_p0 }
   0xc   :  { %1365 = shalt.err (!%p1362_p4)
}
   0xd   :  { %s1476_s23 = smov 128   ;;  %s1477_s24 = smov 8  }
   0xe   :  { %37 = dma.hbm_to_vmem [thread:$0]  %s2639_s1, 256, %s32_s19, [#allocation6], %s1476_s23, %s1476_s23, %s1477_s24  }
   0xf   :  { %s1374_s27 = scalar_lea.vmem %s56_s21, 1280  ;;  %p1379_p6 = scmp.lt.s32.totalorder %s56_s21, %s56_s21 }
  0x10   :  { %p1375_p5 = scmp.ne.s32.totalorder %s56_s21, %s1374_s27  ;;  %p1380_p7 = scmp.lt.s32.totalorder %s1374_s27, %s1374_s27 }
  0x12   :  { %p1381_p8 = por %p1380_p7, %p1379_p6 }
  0x14   :  { %p1382_p9 = pnand %p1381_p8, %p1375_p5 }
  0x16   :  { %1385 = shalt.err (!%p1382_p9)
}
  0x17   :  { %s1478_s28 = smov 640   ;;  %s1479_s29 = smov 40  }
  0x18   :  { %61 = dma.hbm_to_vmem [thread:$0]  %s2641_s3, 1280, %s56_s21, [#allocation9], %s1478_s28, %s1478_s28, %s1479_s29  }
  0x19   :  { %s1480_s7 = smov [#allocation2]   ;;  %s1481_s9 = smov [#allocation7]  }
  0x1a   :  { %s19_s8 = sshll.u32 %s1480_s7, 4  ;;  %s43_s10 = sshll.u32 %s1481_s9, 4  ;;  %s20_s8 = int_to_ptr.vmem [resolvable:$true] %s19_s8  ;;  %s44_s10 = int_to_ptr.vmem [resolvable:$true] %s43_s10 }
  0x1b   :  { %s1394_s1 = scalar_lea.vmem %s20_s8, 256  ;;  %p1399_p11 = scmp.lt.s32.totalorder %s20_s8, %s20_s8 }
  0x1c   :  { %p1395_p10 = scmp.ne.s32.totalorder %s20_s8, %s1394_s1  ;;  %p1400_p12 = scmp.lt.s32.totalorder %s1394_s1, %s1394_s1 }
  0x1e   :  { %p1401_p13 = por %p1400_p12, %p1399_p11 }
  0x20   :  { %p1402_p0 = pnand %p1401_p13, %p1395_p10 }
  0x22   :  { %1405 = shalt.err (!%p1402_p0)
}
  0x23   :  { %25 = dma.hbm_to_vmem [thread:$0]  %s2638_s0, 256, %s20_s8, [#allocation3], %s1476_s23, %s1476_s23, %s1477_s24  }
  0x24   :  { %s1414_s3 = scalar_lea.vmem %s44_s10, 256  ;;  %p1419_p2 = scmp.lt.s32.totalorder %s44_s10, %s44_s10 }
  0x25   :  { %p1415_p1 = scmp.ne.s32.totalorder %s44_s10, %s1414_s3  ;;  %p1420_p3 = scmp.lt.s32.totalorder %s1414_s3, %s1414_s3 }
  0x27   :  { %p1421_p4 = por %p1420_p3, %p1419_p2 }
  0x29   :  { %p1422_p5 = pnand %p1421_p4, %p1415_p1 }
  0x2b   :  { %1425 = shalt.err (!%p1422_p5)
}
  0x2c   :  { %49 = dma.hbm_to_vmem [thread:$0]  %s2640_s2, 256, %s44_s10, [#allocation6], %s1476_s23, %s1476_s23, %s1477_s24  }
  0x2d   :  { %s1482_s15 = smov [#allocation10]  }
  0x2e   :  { %s67_s16 = sshll.u32 %s1482_s15, 4  ;;  %s68_s16 = int_to_ptr.vmem [resolvable:$true] %s67_s16 }
  0x2f   :  { %s1434_s17 = scalar_lea.vmem %s68_s16, 2048  ;;  %p1439_p7 = scmp.lt.s32.totalorder %s68_s16, %s68_s16 }
  0x30   :  { %p1435_p6 = scmp.ne.s32.totalorder %s68_s16, %s1434_s17  ;;  %p1440_p8 = scmp.lt.s32.totalorder %s1434_s17, %s1434_s17 }
  0x32   :  { %p1441_p9 = por %p1440_p8, %p1439_p7 }
  0x34   :  { %p1442_p10 = pnand %p1441_p9, %p1435_p6 }
  0x36   :  { %1445 = shalt.err (!%p1442_p10)
}
  0x37   :  { %73 = dma.hbm_to_vmem [thread:$0]  %s2642_s4, 2048, %s68_s16, [#allocation9], %s1476_s23, %s1476_s23, %s1477_s24  }
  0x38   :  { %1466 = dma.done.wait [#allocation3], 256  }
  0x39   :  { %1467 = vsyncadd [#allocation3], 4294967040 }
  0x3a   :  { %1468 = dma.done.wait [#allocation6], 512  }
  0x3b   :  { %1469 = vsyncadd [#allocation6], 4294966784 }
  0x3c   :  { %1470 = dma.done.wait [#allocation9], 3328  }
  0x3d   :  { %1471 = vsyncadd [#allocation9], 4294963968  ;;  %v1483_v0 = vmov 0.0   ;;  %v92_v1 = vld [vmem:[#allocation5 + $0x8] sm:$0xff]  ;;  %v90_v2 = vld [vmem:[#allocation2 + $0x8] sm:$0xff]  ;;  %vm101_vm0 = vcmask 130048   ;;  %v367_v38 = vlaneseq }
  0x3e   :  { %172 = vmatprep.mubr.f32.mxu0 %v1483_v0  ;;  %v91_v3 = vld [vmem:[#allocation5] sm:$0xff]  ;;  %136 = vmatprep.subr.mxu0 %v92_v1  ;;  %v89_v4 = vld [vmem:[#allocation2] sm:$0xff]  ;;  %v96_v5 = vmul.f32 %v92_v1, %v92_v1  ;;  %v94_v6 = vmul.f32 %v90_v2, %v90_v2  ;;  %v98_v10 = vmul.f32 %v92_v1, %v90_v2  ;;  %v100_v11 = vld [vmem:[#allocation7 + $0x8] sm:$0xff]  ;;  %s1484_s2 = smov 4   ;;  %s1485_s4 = smov 5  }
  0x3f   :  { %137 = vmatpush1.msra.mxu0 %v90_v2  ;;  %v99_v7 = vld [vmem:[#allocation7] sm:$0xff]  ;;  %v95_v8 = vmul.f32 %v91_v3, %v91_v3  ;;  %v93_v9 = vmul.f32 %v89_v4, %v89_v4  ;;  %v97_v12 = vmul.f32 %v91_v3, %v89_v4  ;;  %s1486_s19 = smov 3   ;;  %s1487_s20 = smov 2   ;;  %v1760_v41 = vand.u32 127, %v367_v38  ;;  %v1782_v48 = vld [vmem:[#allocation8 + $0x8] sm:$0xff] }
  0x40   :  { %138 = vmatprep.subr.mxu0 %v91_v3  ;;  %s1488_s21 = smov 1   ;;  %s1489_s22 = smov 127   ;;  %v1762_v42 = vshrl.u32 %v367_v38, 7 }
  0x41   :  { %139 = vmatpush1.msra.mxu0 %v89_v4  ;;  %s1490_s23 = smov 126   ;;  %s1491_s24 = smov 125   ;;  %vm369_vm1 = vcmp.lt.s32.totalorder %v1760_v41, 5  ;;  %vm511_vm2 = vcmp.lt.s32.totalorder %v1760_v41, 3  ;;  %vm440_vm3 = vcmp.lt.s32.totalorder %v1760_v41, 4  ;;  %vm582_vm4 = vcmp.lt.s32.totalorder %v1760_v41, 2 }
  0x42   :  { %1251 = vmatmul.mubr.msk.f32.vlgmr.msra.gmra.mxu0 %vm101_vm0, %v99_v7  ;;  %213 = vmatprep.subr.mxu0 %v96_v5  ;;  %s1492_s25 = smov 124   ;;  %s1493_s26 = smov 123   ;;  %v1769_v43 = vsub.s32 2, %v1762_v42  ;;  %v1772_v44 = vsub.s32 0, %v1762_v42  ;;  %v1775_v45 = vsub.s32 1, %v1762_v42  ;;  %v1786_v49 = vsub.s32 3, %v1762_v42 }
  0x43   :  { %178 = vmatprep.mubr.f32.mxu0 %v1483_v0  ;;  %214 = vmatpush1.msra.mxu0 %v94_v6  ;;  %v1809_v54 = vsub.s32 4, %v1762_v42  ;;  %vm653_vm5 = vcmp.lt.s32.totalorder %v1760_v41, 1  ;;  %v1847_v4 = vsub.s32 5, %v1762_v42  ;;  %vm764_vm6 = vcmp.lt.s32.totalorder %v1760_v41, 127  ;;  %s1494_s27 = smov [#allocation11]  }
  0x44   :  { %215 = vmatprep.subr.mxu0 %v95_v8  ;;  %2696 = vst [vmem:[#allocation27_spill] sm:$0xff] %v1769_v43  ;;  %2698 = vst [vmem:[#allocation29_spill] sm:$0xff] %v1786_v49  ;;  %v1790_v50 = vrot.slane %v1782_v48, %v1772_v44  ;;  %v458_v51 = vrot.slane %v1782_v48, %v1775_v45  ;;  %v1805_v53 = vrot.slane %v1782_v48, %v1769_v43  ;;  %s1240_s28 = sshll.u32 %s1494_s27, 4  ;;  %s1241_s28 = int_to_ptr.vmem [resolvable:$true] %s1240_s28 }
  0x45   :  { %216 = vmatpush1.msra.mxu0 %v93_v9  ;;  %2699 = vst [vmem:[#allocation30_spill] sm:$0xff] %v1809_v54  ;;  %v1825_v59 = vrot.slane %v1782_v48, %v1786_v49  ;;  %v1862_v9 = vrot.slane %v1782_v48, %v1847_v4  ;;  %vm835_vm7 = vcmp.lt.s32.totalorder %v1760_v41, 126  ;;  %vm906_vm8 = vcmp.lt.s32.totalorder %v1760_v41, 125  ;;  %s1446_s29 = scalar_lea.vmem %s1241_s28, 16  ;;  %s1450_s30 = scalar_lea.vmem %s1241_s28, 32 }
  0x46   :  { %1252 = vmatmul.mubr.msk.f32.gmra.mxu0 %vm101_vm0, %v100_v11  ;;  %1279 = vmatprep.subr.mxu0 %v98_v10  ;;  %vm977_vm9 = vcmp.lt.s32.totalorder %v1760_v41, 124  ;;  %vm1048_vm10 = vcmp.lt.s32.totalorder %v1760_v41, 123  ;;  %p1447_p11 = scmp.ne.s32.totalorder %s1241_s28, %s1446_s29  ;;  %p1451_p12 = scmp.lt.s32.totalorder %s1241_s28, %s1241_s28 }
  0x47   :  { %249 = vmatprep.mubr.f32.mxu0 %v1483_v0  ;;  %p1452_p13 = scmp.lt.s32.totalorder %s1450_s30, %s1446_s29 }
  0x49   :  { %p1453_p0 = por %p1452_p13, %p1451_p12 }
  0x4a   :  { %1253 = vmatmul.mubr.msk.f32.vlgmr.msra.gmra.mxu0 %vm101_vm0, %v99_v7 }
  0x4b   :  { %255 = vmatprep.mubr.f32.mxu0 %v1483_v0  ;;  %1280 = vmatpush3.msra.mxu0 %v98_v10  ;;  %v1840_v0 = vrot.slane %v1782_v48, %v1809_v54  ;;  %p1454_p1 = pnand %p1453_p0, %p1447_p11 }
  0x4c   :  { %1281 = vmatprep.subr.mxu0 %v97_v12 }
  0x4d   :  { %1282 = vmatpush3.msra.mxu0 %v97_v12 }
  0x4e   :  { %1254 = vmatmul.mubr.msk.f32.gmra.mxu0 %vm101_vm0, %v100_v11 }
  0x4f   :  { %1283 = vmatprep.mubr.msk.f32.mxu0 %vm101_vm0, %v99_v7 }
  0x52   :  { %1284 = vmatmul.mubr.msk.f32.vlgmr.msra.gmra.mxu0 %vm101_vm0, %v100_v11 }
 0x102   :  { %v1558_v13 = vpop.f32.mrf.mxu0 }
 0x103   :  { %420 = vrot.lane.b32.xlu1 %v1558_v13, %s1484_s2  ;;  %347 = vrot.lane.b32.xlu0 %v1558_v13, %s1485_s4 }
 0x104   :  { %v1564_v14 = vpop.f32.mrf.mxu0 }
 0x106   :  { %v1598_v15 = vpop.f32.mrf.mxu0 }
 0x107   :  { %491 = vrot.lane.b32.xlu0 %v1558_v13, %s1486_s19  ;;  %495 = vrot.lane.b32.xlu1 %v1564_v14, %s1486_s19 }
 0x108   :  { %v1612_v16 = vpop.f32.mrf.mxu0 }
 0x10a   :  { %v1634_v17 = vpop.f32.mrf.mxu0 }
 0x10b   :  { %562 = vrot.lane.b32.xlu0 %v1558_v13, %s1487_s20  ;;  %566 = vrot.lane.b32.xlu1 %v1564_v14, %s1487_s20 }
 0x10c   :  { %v1640_v18 = vpop.f32.mrf.mxu0 }
 0x10e   :  { %v1662_v19 = vpop.f32.mrf.mxu0 }
 0x10f   :  { %633 = vrot.lane.b32.xlu0 %v1558_v13, %s1488_s21  ;;  %637 = vrot.lane.b32.xlu1 %v1564_v14, %s1488_s21 }
 0x110   :  { %v1708_v26 = vpop.f32.mrf.mxu0 }
 0x112   :  { %v1750_v37 = vpop.f32.mrf.mxu0 }
 0x113   :  { %744 = vrot.lane.b32.xlu0 %v1558_v13, %s1489_s22  ;;  %748 = vrot.lane.b32.xlu1 %v1564_v14, %s1489_s22 }
 0x114   :  { %v1853_v6 = vpop.f32.mrf.mxu0 }
 0x115   :  { %2703 = vst [vmem:[#allocation34_spill] sm:$0xff] %v1853_v6 }
 0x117   :  { %815 = vrot.lane.b32.xlu0 %v1558_v13, %s1490_s23  ;;  %819 = vrot.lane.b32.xlu1 %v1564_v14, %s1490_s23 }
 0x11b   :  { %886 = vrot.lane.b32.xlu0 %v1558_v13, %s1491_s24  ;;  %890 = vrot.lane.b32.xlu1 %v1564_v14, %s1491_s24 }
 0x11f   :  { %957 = vrot.lane.b32.xlu0 %v1558_v13, %s1492_s25  ;;  %961 = vrot.lane.b32.xlu1 %v1564_v14, %s1492_s25 }
 0x123   :  { %1028 = vrot.lane.b32.xlu0 %v1558_v13, %s1493_s26  ;;  %1032 = vrot.lane.b32.xlu1 %v1564_v14, %s1493_s26 }
 0x127   :  { %351 = vrot.lane.b32.xlu0 %v1564_v14, %s1485_s4  ;;  %422 = vrot.lane.b32.xlu1 %v1598_v15, %s1484_s2 }
 0x12b   :  { %424 = vrot.lane.b32.xlu0 %v1564_v14, %s1484_s2  ;;  %493 = vrot.lane.b32.xlu1 %v1598_v15, %s1486_s19 }
 0x12f   :  { %564 = vrot.lane.b32.xlu1 %v1598_v15, %s1487_s20  ;;  %349 = vrot.lane.b32.xlu0 %v1598_v15, %s1485_s4 }
 0x133   :  { %635 = vrot.lane.b32.xlu1 %v1598_v15, %s1488_s21  ;;  %426 = vrot.lane.b32.xlu0 %v1612_v16, %s1484_s2 }
 0x137   :  { %746 = vrot.lane.b32.xlu1 %v1598_v15, %s1489_s22  ;;  %497 = vrot.lane.b32.xlu0 %v1612_v16, %s1486_s19 }
 0x13b   :  { %817 = vrot.lane.b32.xlu1 %v1598_v15, %s1490_s23  ;;  %568 = vrot.lane.b32.xlu0 %v1612_v16, %s1487_s20 }
 0x13f   :  { %888 = vrot.lane.b32.xlu1 %v1598_v15, %s1491_s24  ;;  %639 = vrot.lane.b32.xlu0 %v1612_v16, %s1488_s21 }
 0x143   :  { %959 = vrot.lane.b32.xlu1 %v1598_v15, %s1492_s25  ;;  %750 = vrot.lane.b32.xlu0 %v1612_v16, %s1489_s22 }
 0x147   :  { %821 = vrot.lane.b32.xlu0 %v1612_v16, %s1490_s23  ;;  %353 = vrot.lane.b32.xlu1 %v1612_v16, %s1485_s4 }
 0x14b   :  { %892 = vrot.lane.b32.xlu0 %v1612_v16, %s1491_s24  ;;  %359 = vrot.lane.b32.xlu1 %v1640_v18, %s1485_s4 }
 0x14f   :  { %963 = vrot.lane.b32.xlu0 %v1612_v16, %s1492_s25  ;;  %432 = vrot.lane.b32.xlu1 %v1640_v18, %s1484_s2 }
 0x153   :  { %355 = vrot.lane.b32.xlu0 %v1634_v17, %s1485_s4  ;;  %503 = vrot.lane.b32.xlu1 %v1640_v18, %s1486_s19 }
 0x157   :  { %428 = vrot.lane.b32.xlu0 %v1634_v17, %s1484_s2  ;;  %574 = vrot.lane.b32.xlu1 %v1640_v18, %s1487_s20 }
 0x15b   :  { %499 = vrot.lane.b32.xlu0 %v1634_v17, %s1486_s19  ;;  %645 = vrot.lane.b32.xlu1 %v1640_v18, %s1488_s21 }
 0x15f   :  { %570 = vrot.lane.b32.xlu0 %v1634_v17, %s1487_s20  ;;  %357 = vrot.lane.b32.xlu1 %v1662_v19, %s1485_s4 }
 0x163   :  { %641 = vrot.lane.b32.xlu0 %v1634_v17, %s1488_s21  ;;  %430 = vrot.lane.b32.xlu1 %v1662_v19, %s1484_s2 }
 0x167   :  { %752 = vrot.lane.b32.xlu0 %v1634_v17, %s1489_s22  ;;  %501 = vrot.lane.b32.xlu1 %v1662_v19, %s1486_s19 }
 0x16b   :  { %823 = vrot.lane.b32.xlu0 %v1634_v17, %s1490_s23  ;;  %572 = vrot.lane.b32.xlu1 %v1662_v19, %s1487_s20 }
 0x16f   :  { %894 = vrot.lane.b32.xlu0 %v1634_v17, %s1491_s24  ;;  %754 = vrot.lane.b32.xlu1 %v1662_v19, %s1489_s22 }
 0x173   :  { %965 = vrot.lane.b32.xlu0 %v1634_v17, %s1492_s25  ;;  %825 = vrot.lane.b32.xlu1 %v1662_v19, %s1490_s23 }
 0x175   :  { %v1688_v20 = vpop.permute.xlu1 %420  ;;  %v1690_v21 = vpop.permute.xlu0 %347 }
 0x176   :  { %2685 = vst [vmem:[#allocation16_spill] sm:$0xff] %v1688_v20  ;;  %2686 = vst [vmem:[#allocation17_spill] sm:$0xff] %v1690_v21 }
 0x177   :  { %1036 = vrot.lane.b32.xlu0 %v1634_v17, %s1493_s26  ;;  %896 = vrot.lane.b32.xlu1 %v1662_v19, %s1491_s24 }
 0x179   :  { %v1696_v22 = vpop.permute.xlu0 %491  ;;  %v1698_v23 = vpop.permute.xlu1 %495 }
 0x17a   :  { %2687 = vst [vmem:[#allocation18_spill] sm:$0xff] %v1696_v22  ;;  %v518_v57 = vsel %vm511_vm2, %v1696_v22, %v1698_v23 }
 0x17b   :  { %756 = vrot.lane.b32.xlu0 %v1640_v18, %s1489_s22  ;;  %967 = vrot.lane.b32.xlu1 %v1662_v19, %s1492_s25  ;;  %v543_v63 = vmul.f32 %v1805_v53, %v518_v57  ;;  %v725_v57 = vmul.f32 %v1862_v9, %v1564_v14 }
 0x17d   :  { %v1704_v24 = vpop.permute.xlu0 %562  ;;  %v1706_v25 = vpop.permute.xlu1 %566 }
 0x17e   :  { %2688 = vst [vmem:[#allocation19_spill] sm:$0xff] %v1704_v24  ;;  %v589_v62 = vsel %vm582_vm4, %v1704_v24, %v1706_v25 }
 0x17f   :  { %827 = vrot.lane.b32.xlu0 %v1640_v18, %s1490_s23  ;;  %647 = vrot.lane.b32.xlu1 %v1708_v26, %s1488_s21  ;;  %v614_v7 = vmul.f32 %v1825_v59, %v589_v62 }
 0x181   :  { %v1714_v27 = vpop.permute.xlu0 %633  ;;  %v1716_v28 = vpop.permute.xlu1 %637 }
 0x182   :  { %2689 = vst [vmem:[#allocation20_spill] sm:$0xff] %v1714_v27  ;;  %v660_v5 = vsel %vm653_vm5, %v1714_v27, %v1716_v28 }
 0x183   :  { %898 = vrot.lane.b32.xlu0 %v1640_v18, %s1491_s24  ;;  %758 = vrot.lane.b32.xlu1 %v1708_v26, %s1489_s22  ;;  %v685_v10 = vmul.f32 %v1840_v0, %v660_v5 }
 0x185   :  { %v1722_v29 = vpop.permute.xlu0 %744  ;;  %v1724_v30 = vpop.permute.xlu1 %748 }
 0x186   :  { %2690 = vst [vmem:[#allocation21_spill] sm:$0xff] %v1722_v29 }
 0x187   :  { %969 = vrot.lane.b32.xlu0 %v1640_v18, %s1492_s25  ;;  %829 = vrot.lane.b32.xlu1 %v1708_v26, %s1490_s23 }
 0x189   :  { %v1730_v31 = vpop.permute.xlu0 %815  ;;  %v1732_v32 = vpop.permute.xlu1 %819 }
 0x18a   :  { %2691 = vst [vmem:[#allocation22_spill] sm:$0xff] %v1730_v31 }
 0x18b   :  { %643 = vrot.lane.b32.xlu0 %v1662_v19, %s1488_s21  ;;  %900 = vrot.lane.b32.xlu1 %v1708_v26, %s1491_s24 }
 0x18d   :  { %v1738_v33 = vpop.permute.xlu0 %886  ;;  %v1740_v34 = vpop.permute.xlu1 %890 }
 0x18e   :  { %2692 = vst [vmem:[#allocation23_spill] sm:$0xff] %v1738_v33  ;;  %v1142_v33 = vld [vmem:[#allocation10 + $0x38] sm:$0xff] }
 0x18f   :  { %971 = vrot.lane.b32.xlu1 %v1708_v26, %s1492_s25  ;;  %361 = vrot.lane.b32.xlu0 %v1708_v26, %s1485_s4 }
 0x191   :  { %v1746_v35 = vpop.permute.xlu0 %957  ;;  %v1748_v36 = vpop.permute.xlu1 %961 }
 0x192   :  { %2693 = vst [vmem:[#allocation24_spill] sm:$0xff] %v1746_v35 }
 0x193   :  { %434 = vrot.lane.b32.xlu0 %v1708_v26, %s1484_s2  ;;  %438 = vrot.lane.b32.xlu1 %v1750_v37, %s1484_s2 }
 0x195   :  { %v1756_v39 = vpop.permute.xlu0 %1028  ;;  %v1758_v40 = vpop.permute.xlu1 %1032 }
 0x196   :  { %2694 = vst [vmem:[#allocation25_spill] sm:$0xff] %v1756_v39  ;;  %2695 = vst [vmem:[#allocation26_spill] sm:$0xff] %v1758_v40  ;;  %v1143_v40 = vld [vmem:[#allocation10 + $0x40] sm:$0xff] }
 0x197   :  { %505 = vrot.lane.b32.xlu0 %v1708_v26, %s1486_s19  ;;  %509 = vrot.lane.b32.xlu1 %v1750_v37, %s1486_s19 }
 0x199   :  { %v1778_v46 = vpop.permute.xlu0 %351  ;;  %v1780_v47 = vpop.permute.xlu1 %422 }
 0x19a   :  { %2697 = vst [vmem:[#allocation28_spill] sm:$0xff] %v1780_v47  ;;  %v376_v52 = vsel %vm369_vm1, %v1690_v21, %v1778_v46  ;;  %v1149_v21 = vld [vmem:[#allocation10 + $0x70] sm:$0xff] }
 0x19b   :  { %576 = vrot.lane.b32.xlu0 %v1708_v26, %s1487_s20  ;;  %580 = vrot.lane.b32.xlu1 %v1750_v37, %s1487_s20  ;;  %v401_v60 = vmul.f32 %v1790_v50, %v376_v52 }
 0x19d   :  { %v1811_v55 = vpop.permute.xlu0 %424  ;;  %v1813_v56 = vpop.permute.xlu1 %493 }
 0x19e   :  { %2700 = vst [vmem:[#allocation31_spill] sm:$0xff] %v1813_v56  ;;  %v447_v58 = vsel %vm440_vm3, %v1688_v20, %v1811_v55 }
 0x19f   :  { %v472_v61 = vmul.f32 %v458_v51, %v447_v58  ;;  %651 = vrot.lane.b32.xlu1 %v1750_v37, %s1488_s21  ;;  %365 = vrot.lane.b32.xlu0 %v1750_v37, %s1485_s4 }
 0x1a1   :  { %v482_v1 = vadd.f32 %v472_v61, %v401_v60  ;;  %v1842_v2 = vpop.permute.xlu1 %564  ;;  %v1844_v3 = vpop.permute.xlu0 %349 }
 0x1a2   :  { %2701 = vst [vmem:[#allocation32_spill] sm:$0xff] %v1842_v2  ;;  %2702 = vst [vmem:[#allocation33_spill] sm:$0xff] %v1844_v3 }
 0x1a3   :  { %v553_v8 = vadd.f32 %v543_v63, %v482_v1  ;;  %762 = vrot.lane.b32.xlu0 %v1750_v37, %s1489_s22  ;;  %363 = vrot.lane.b32.xlu1 %v1853_v6, %s1485_s4 }
 0x1a5   :  { %v624_v11 = vadd.f32 %v614_v7, %v553_v8  ;;  %v1865_v12 = vpop.permute.xlu1 %635  ;;  %v1867_v38 = vpop.permute.xlu0 %426 }
 0x1a6   :  { %v448_v8 = vsel %vm440_vm3, %v1780_v47, %v1867_v38 }
 0x1a7   :  { %833 = vrot.lane.b32.xlu0 %v1750_v37, %s1490_s23  ;;  %436 = vrot.lane.b32.xlu1 %v1853_v6, %s1484_s2  ;;  %v695_v52 = vadd.f32 %v685_v10, %v624_v11  ;;  %v477_v24 = vmul.f32 %v458_v51, %v448_v8 }
 0x1a9   :  { %v1875_v58 = vpop.permute.xlu1 %746  ;;  %v1877_v60 = vpop.permute.xlu0 %497  ;;  %v1879_v61 = vadd.f32 %v725_v57, %v695_v52  ;;  %v1150_v52 = vld [vmem:[#allocation10 + $0x78] sm:$0xff] }
 0x1aa   :  { %2704 = vst [vmem:[#allocation35_spill] sm:$0xff] %v1875_v58  ;;  %v519_v57 = vsel %vm511_vm2, %v1813_v56, %v1877_v60  ;;  %1286 = vmatprep.subr.mxu1 %v1150_v52 }
 0x1ab   :  { %904 = vrot.lane.b32.xlu0 %v1750_v37, %s1491_s24  ;;  %1030 = vrot.lane.b32.xlu1 %v1598_v15, %s1493_s26 }
 0x1ac   :  { %1287 = vmatpush3.msra.mxu1 %v1150_v52  ;;  %v1147_v52 = vld [vmem:[#allocation10 + $0x60] sm:$0xff] }
 0x1ad   :  { %v1885_v62 = vpop.permute.xlu1 %817  ;;  %v1887_v63 = vpop.permute.xlu0 %568  ;;  %1288 = vmatprep.subr.mxu1 %v1149_v21 }
 0x1ae   :  { %2705 = vst [vmem:[#allocation36_spill] sm:$0xff] %v1885_v62  ;;  %v590_v20 = vsel %vm582_vm4, %v1842_v2, %v1887_v63  ;;  %1289 = vmatpush3.msra.mxu1 %v1149_v21  ;;  %v1146_v21 = vld [vmem:[#allocation10 + $0x58] sm:$0xff] }
 0x1af   :  { %507 = vrot.lane.b32.xlu0 %v1853_v6, %s1486_s19  ;;  %1038 = vrot.lane.b32.xlu1 %v1662_v19, %s1493_s26 }
 0x1b1   :  { %v1893_v14 = vpop.permute.xlu1 %888  ;;  %v1895_v1 = vpop.permute.xlu0 %639 }
 0x1b2   :  { %2706 = vst [vmem:[#allocation37_spill] sm:$0xff] %v1893_v14 }
 0x1b3   :  { %578 = vrot.lane.b32.xlu0 %v1853_v6, %s1487_s20  ;;  %760 = vrot.lane.b32.xlu1 %v1853_v6, %s1489_s22 }
 0x1b5   :  { %v1901_v5 = vpop.permute.xlu1 %959  ;;  %v1903_v7 = vpop.permute.xlu0 %750 }
 0x1b6   :  { %2707 = vst [vmem:[#allocation38_spill] sm:$0xff] %v1901_v5  ;;  %v548_v5 = vmul.f32 %v1805_v53, %v519_v57  ;;  %v1958_v57 = vld [vmem:[#allocation8 + $0x18] sm:$0xff] }
 0x1b7   :  { %649 = vrot.lane.b32.xlu0 %v1853_v6, %s1488_s21  ;;  %831 = vrot.lane.b32.xlu1 %v1853_v6, %s1490_s23  ;;  %v1981_v58 = vrot.slane %v1958_v57, %v1775_v45 }
 0x1b9   :  { %v1913_v10 = vpop.permute.xlu0 %821  ;;  %v1915_v11 = vpop.permute.xlu1 %353 }
 0x1ba   :  { %v377_v27 = vsel %vm369_vm1, %v1844_v3, %v1915_v11 }
 0x1bb   :  { %v406_v22 = vmul.f32 %v1790_v50, %v377_v27  ;;  %975 = vrot.lane.b32.xlu0 %v1750_v37, %s1492_s25  ;;  %902 = vrot.lane.b32.xlu1 %v1853_v6, %s1491_s24  ;;  %v1148_v27 = vld [vmem:[#allocation10 + $0x68] sm:$0xff]  ;;  %v619_v50 = vmul.f32 %v1825_v59, %v590_v20  ;;  %v1954_v20 = vld [vmem:[#allocation8 + $0x10] sm:$0xff] }
 0x1bc   :  { %1290 = vmatprep.subr.mxu1 %v1148_v27  ;;  %v1996_v35 = vrot.slane %v1954_v20, %v1769_v43 }
 0x1bd   :  { %v487_v14 = vadd.f32 %v477_v24, %v406_v22  ;;  %v1935_v62 = vpop.permute.xlu0 %892  ;;  %v1937_v51 = vpop.permute.xlu1 %359  ;;  %1291 = vmatpush3.msra.mxu1 %v1148_v27  ;;  %v1962_v27 = vrot.slane %v1954_v20, %v1772_v44 }
 0x1be   :  { %2708 = vst [vmem:[#allocation39_spill] sm:$0xff] %v1937_v51  ;;  %1292 = vmatprep.subr.mxu1 %v1147_v52 }
 0x1bf   :  { %v558_v8 = vadd.f32 %v548_v5, %v487_v14  ;;  %1034 = vrot.lane.b32.xlu0 %v1612_v16, %s1493_s26  ;;  %973 = vrot.lane.b32.xlu1 %v1853_v6, %s1492_s25  ;;  %v1145_v5 = vld [vmem:[#allocation10 + $0x50] sm:$0xff] }
 0x1c0   :  { %1293 = vmatpush3.msra.mxu1 %v1147_v52  ;;  %v1977_v52 = vrot.slane %v1954_v20, %v1775_v45 }
 0x1c1   :  { %v1944_v53 = vadd.f32 %v619_v50, %v558_v8  ;;  %v1946_v22 = vpop.permute.xlu0 %963  ;;  %v1948_v24 = vpop.permute.xlu1 %432  ;;  %1294 = vmatprep.subr.mxu1 %v1146_v21  ;;  %v1969_v8 = vrot.slane %v1958_v57, %v1772_v44 }
 0x1c2   :  { %2709 = vst [vmem:[#allocation40_spill] sm:$0xff] %v1948_v24  ;;  %1295 = vmatpush3.msra.mxu1 %v1146_v21 }
 0x1c3   :  { %1040 = vrot.lane.b32.xlu0 %v1640_v18, %s1493_s26  ;;  %1044 = vrot.lane.b32.xlu1 %v1853_v6, %s1493_s26 }
 0x1c4   :  { %1296 = vmatprep.subr.mxu1 %v1145_v5 }
 0x1c5   :  { %v356_v59 = vpop.permute.xlu0 %355  ;;  %v1956_v14 = vpop.permute.xlu1 %503  ;;  %1297 = vmatpush3.msra.mxu1 %v1145_v5 }
 0x1c6   :  { %2710 = vst [vmem:[#allocation41_spill] sm:$0xff] %v1956_v14  ;;  %v374_v50 = vsel %vm369_vm1, %v1778_v46, %v356_v59  ;;  %v1144_v46 = vld [vmem:[#allocation10 + $0x48] sm:$0xff]  ;;  %v372_v21 = vsel %vm369_vm1, %v356_v59, %v1937_v51  ;;  %v2000_v59 = vrot.slane %v1958_v57, %v1769_v43  ;;  %v1141_v43 = vld [vmem:[#allocation10 + $0x30] sm:$0xff] }
 0x1c7   :  { %1042 = vrot.lane.b32.xlu0 %v1708_v26, %s1493_s26  ;;  %1046 = vrot.lane.b32.xlu1 %v1750_v37, %s1493_s26  ;;  %v402_v5 = vmul.f32 %v1962_v27, %v374_v50  ;;  %v403_v51 = vmul.f32 %v1969_v8, %v372_v21 }
 0x1c8   :  { %1298 = vmatprep.subr.mxu1 %v1144_v46 }
 0x1c9   :  { %v429_v2 = vpop.permute.xlu0 %428  ;;  %v1986_v39 = vpop.permute.xlu1 %574  ;;  %1299 = vmatpush3.msra.mxu1 %v1144_v46 }
 0x1ca   :  { %2711 = vst [vmem:[#allocation42_spill] sm:$0xff] %v1986_v39  ;;  %v443_v3 = vsel %vm440_vm3, %v429_v2, %v1948_v24  ;;  %v445_v56 = vsel %vm440_vm3, %v1811_v55, %v429_v2  ;;  %1300 = vmatprep.subr.mxu1 %v1143_v40 }
 0x1cb   :  { %v473_v47 = vmul.f32 %v1977_v52, %v445_v56  ;;  %v474_v24 = vmul.f32 %v1981_v58, %v443_v3  ;;  %1301 = vmatpush3.msra.mxu1 %v1143_v40  ;;  %v2022_v40 = vrot.slane %v1958_v57, %v1786_v49 }
 0x1cc   :  { %1302 = vmatprep.subr.mxu1 %v1142_v33 }
 0x1cd   :  { %v483_v55 = vadd.f32 %v473_v47, %v402_v5  ;;  %v484_v2 = vadd.f32 %v474_v24, %v403_v51  ;;  %v500_v6 = vpop.permute.xlu0 %499  ;;  %v2006_v31 = vpop.permute.xlu1 %645  ;;  %v2018_v47 = vrot.slane %v1954_v20, %v1786_v49  ;;  %1303 = vmatpush3.msra.mxu1 %v1142_v33  ;;  %v1140_v51 = vld [vmem:[#allocation10 + $0x28] sm:$0xff] }
 0x1ce   :  { %2712 = vst [vmem:[#allocation43_spill] sm:$0xff] %v2006_v31  ;;  %v514_v50 = vsel %vm511_vm2, %v500_v6, %v1956_v14  ;;  %v516_v56 = vsel %vm511_vm2, %v1698_v23, %v500_v6  ;;  %1304 = vmatprep.subr.mxu1 %v1141_v43  ;;  %v1139_v6 = vld [vmem:[#allocation10 + $0x20] sm:$0xff] }
 0x1cf   :  { %v544_v3 = vmul.f32 %v1996_v35, %v516_v56  ;;  %v545_v46 = vmul.f32 %v2000_v59, %v514_v50  ;;  %1305 = vmatpush3.msra.mxu1 %v1141_v43  ;;  %v2040_v43 = vrot.slane %v1954_v20, %v1809_v54 }
 0x1d0   :  { %1306 = vmatprep.subr.mxu1 %v1140_v51 }
 0x1d1   :  { %v554_v24 = vadd.f32 %v544_v3, %v483_v55  ;;  %v555_v21 = vadd.f32 %v545_v46, %v484_v2  ;;  %v571_v5 = vpop.permute.xlu0 %570  ;;  %v2024_v23 = vpop.permute.xlu1 %357  ;;  %v2044_v3 = vrot.slane %v1958_v57, %v1809_v54  ;;  %1307 = vmatpush3.msra.mxu1 %v1140_v51  ;;  %v2047_v46 = vsub.s32 6, %v1762_v42 }
 0x1d2   :  { %v585_v50 = vsel %vm582_vm4, %v571_v5, %v1986_v39  ;;  %v587_v56 = vsel %vm582_vm4, %v1706_v25, %v571_v5  ;;  %v375_v33 = vsel %vm369_vm1, %v1915_v11, %v2024_v23  ;;  %v1138_v25 = vld [vmem:[#allocation10 + $0x18] sm:$0xff]  ;;  %1308 = vmatprep.subr.mxu1 %v1139_v6 }
 0x1d3   :  { %v615_v55 = vmul.f32 %v2018_v47, %v587_v56  ;;  %v616_v2 = vmul.f32 %v2022_v40, %v585_v50  ;;  %1309 = vmatpush3.msra.mxu1 %v1139_v6  ;;  %v1137_v50 = vld [vmem:[#allocation10 + $0x10] sm:$0xff] }
 0x1d4   :  { %1310 = vmatprep.subr.mxu1 %v1138_v25 }
 0x1d5   :  { %v625_v11 = vadd.f32 %v615_v55, %v554_v24  ;;  %v626_v5 = vadd.f32 %v616_v2, %v555_v21  ;;  %v642_v39 = vpop.permute.xlu0 %641  ;;  %v2049_v56 = vpop.permute.xlu1 %430  ;;  %v782_v24 = vrot.slane %v1782_v48, %v2047_v46  ;;  %v407_v21 = vmul.f32 %v1962_v27, %v375_v33  ;;  %1311 = vmatpush3.msra.mxu1 %v1138_v25 }
 0x1d6   :  { %v656_v14 = vsel %vm653_vm5, %v642_v39, %v2006_v31  ;;  %v658_v51 = vsel %vm653_vm5, %v1716_v28, %v642_v39  ;;  %v446_v54 = vsel %vm440_vm3, %v1867_v38, %v2049_v56  ;;  %v1136_v31 = vld [vmem:[#allocation10 + $0x8] sm:$0xff]  ;;  %1312 = vmatprep.subr.mxu1 %v1137_v50  ;;  %v2069_v28 = vsub.s32 7, %v1762_v42 }
 0x1d7   :  { %v686_v6 = vmul.f32 %v2040_v43, %v658_v51  ;;  %v687_v55 = vmul.f32 %v2044_v3, %v656_v14  ;;  %v478_v2 = vmul.f32 %v1977_v52, %v446_v54  ;;  %1313 = vmatpush3.msra.mxu1 %v1137_v50  ;;  %v1135_v14 = vld [vmem:[#allocation10] sm:$0xff]  ;;  %v661_v54 = vsel %vm653_vm5, %v1865_v12, %v1895_v1 }
 0x1d8   :  { %1314 = vmatprep.subr.mxu1 %v1136_v31  ;;  %v2091_v50 = vld [vmem:[#allocation8 + $0x30] sm:$0x7]  ;;  %v690_v51 = vmul.f32 %v1840_v0, %v661_v54 }
 0x1d9   :  { %v2071_v39 = vadd.f32 %v686_v6, %v625_v11  ;;  %v2073_v38 = vadd.f32 %v687_v55, %v626_v5  ;;  %v488_v49 = vadd.f32 %v478_v2, %v407_v21  ;;  %v753_v27 = vpop.permute.xlu0 %752  ;;  %v2075_v33 = vpop.permute.xlu1 %501  ;;  %v853_v5 = vrot.slane %v1782_v48, %v2069_v28  ;;  %1315 = vmatpush3.msra.mxu1 %v1136_v31 }
 0x1da   :  { %v769_v42 = vsel %vm764_vm6, %v1724_v30, %v753_v27  ;;  %v517_v52 = vsel %vm511_vm2, %v1877_v60, %v2075_v33  ;;  %1316 = vmatprep.subr.mxu1 %v1135_v14  ;;  %v924_v0 = vrot.slane %v2091_v50, %v1772_v44 }
 0x1db   :  { %2713 = vst [vmem:[#allocation44_spill] sm:$0xff] %v2073_v38  ;;  %v796_v25 = vmul.f32 %v782_v24, %v769_v42  ;;  %v549_v11 = vmul.f32 %v1996_v35, %v517_v52  ;;  %1317 = vmatpush3.msra.mxu1 %v1135_v14  ;;  %v730_v42 = vmul.f32 %v1862_v9, %v1612_v16 }
 0x1dd   :  { %v806_v21 = vadd.f32 %v796_v25, %v1879_v61  ;;  %v559_v6 = vadd.f32 %v549_v11, %v488_v49  ;;  %v824_v55 = vpop.permute.xlu0 %823  ;;  %v2096_v60 = vpop.permute.xlu1 %572  ;;  %v700_v49 = vadd.f32 %v690_v51, %v1944_v53  ;;  %v995_v51 = vrot.slane %v2091_v50, %v1775_v45 }
 0x1de   :  { %v840_v35 = vsel %vm835_vm7, %v1732_v32, %v824_v55  ;;  %v588_v31 = vsel %vm582_vm4, %v1887_v63, %v2096_v60 }
 0x1df   :  { %v867_v48 = vmul.f32 %v853_v5, %v840_v35  ;;  %v620_v2 = vmul.f32 %v2018_v47, %v588_v31  ;;  %v740_v53 = vadd.f32 %v730_v42, %v700_v49 }
 0x1e1   :  { %v877_v61 = vadd.f32 %v867_v48, %v806_v21  ;;  %v2110_v14 = vadd.f32 %v620_v2, %v559_v6  ;;  %v895_v54 = vpop.permute.xlu0 %894  ;;  %v755_v52 = vpop.permute.xlu1 %754 }
 0x1e2   :  { %v911_v63 = vsel %vm906_vm8, %v1740_v34, %v895_v54  ;;  %v770_v47 = vsel %vm764_vm6, %v1903_v7, %v755_v52 }
 0x1e3   :  { %v938_v25 = vmul.f32 %v924_v0, %v911_v63  ;;  %v801_v11 = vmul.f32 %v782_v24, %v770_v47 }
 0x1e5   :  { %v948_v21 = vadd.f32 %v938_v25, %v877_v61  ;;  %v811_v6 = vadd.f32 %v801_v11, %v740_v53  ;;  %v966_v16 = vpop.permute.xlu0 %965  ;;  %v826_v9 = vpop.permute.xlu1 %825  ;;  %v715_v61 = vrot.slane %v1954_v20, %v1847_v4  ;;  %v786_v53 = vrot.slane %v1954_v20, %v2047_v46 }
 0x1e6   :  { %v982_v35 = vsel %vm977_vm9, %v1748_v36, %v966_v16  ;;  %v841_v31 = vsel %vm835_vm7, %v1913_v10, %v826_v9 }
 0x1e7   :  { %v1009_v48 = vmul.f32 %v995_v51, %v982_v35  ;;  %v872_v2 = vmul.f32 %v853_v5, %v841_v31  ;;  %v726_v5 = vmul.f32 %v715_v61, %v1634_v17 }
 0x1e9   :  { %v2129_v24 = vadd.f32 %v1009_v48, %v948_v21  ;;  %v882_v49 = vadd.f32 %v872_v2, %v811_v6  ;;  %v2131_v42 = vpop.permute.xlu0 %1036  ;;  %v897_v63 = vpop.permute.xlu1 %896  ;;  %v736_v48 = vadd.f32 %v726_v5, %v2071_v39 }
 0x1ea   :  { %2715 = vst [vmem:[#allocation46_spill] sm:$0xff] %v2131_v42  ;;  %v912_v47 = vsel %vm906_vm8, %v1935_v62, %v897_v63 }
 0x1eb   :  { %2714 = vst [vmem:[#allocation45_spill] sm:$0xff] %v2129_v24  ;;  %v943_v25 = vmul.f32 %v924_v0, %v912_v47  ;;  %v2152_v47 = vld [vmem:[#allocation8 + $0x38] sm:$0x7] }
 0x1ec   :  { %v928_v39 = vrot.slane %v2152_v47, %v1772_v44 }
 0x1ed   :  { %v953_v11 = vadd.f32 %v943_v25, %v882_v49  ;;  %v2141_v21 = vpop.permute.xlu0 %756  ;;  %v968_v6 = vpop.permute.xlu1 %967  ;;  %v857_v49 = vrot.slane %v1954_v20, %v2069_v28 }
 0x1ee   :  { %2716 = vst [vmem:[#allocation47_spill] sm:$0xff] %v2141_v21  ;;  %v767_v35 = vsel %vm764_vm6, %v753_v27, %v2141_v21  ;;  %v983_v31 = vsel %vm977_vm9, %v1946_v22, %v968_v6 }
 0x1ef   :  { %v797_v0 = vmul.f32 %v786_v53, %v767_v35  ;;  %v1014_v2 = vmul.f32 %v995_v51, %v983_v31  ;;  %v999_v31 = vrot.slane %v2152_v47, %v1775_v45 }
 0x1f1   :  { %v807_v17 = vadd.f32 %v797_v0, %v736_v48  ;;  %v2154_v25 = vadd.f32 %v1014_v2, %v953_v11  ;;  %v2156_v24 = vpop.permute.xlu0 %827  ;;  %v2158_v38 = vpop.permute.xlu1 %647 }
 0x1f2   :  { %2718 = vst [vmem:[#allocation49_spill] sm:$0xff] %v2156_v24  ;;  %v838_v27 = vsel %vm835_vm7, %v824_v55, %v2156_v24  ;;  %v2744_v24 = vld [vmem:[#allocation32_spill] sm:$0xff] }
 0x1f3   :  { %2717 = vst [vmem:[#allocation48_spill] sm:$0xff] %v2154_v25  ;;  %v868_v21 = vmul.f32 %v857_v49, %v838_v27 }
 0x1f5   :  { %v878_v51 = vadd.f32 %v868_v21, %v807_v17  ;;  %v2165_v5 = vpop.permute.xlu0 %898  ;;  %v2167_v20 = vpop.permute.xlu1 %758 }
 0x1f6   :  { %2719 = vst [vmem:[#allocation50_spill] sm:$0xff] %v2165_v5  ;;  %v909_v11 = vsel %vm906_vm8, %v895_v54, %v2165_v5 }
 0x1f7   :  { %v939_v35 = vmul.f32 %v928_v39, %v909_v11  ;;  %v768_v11 = vsel %vm764_vm6, %v755_v52, %v2167_v20 }
 0x1f9   :  { %v949_v48 = vadd.f32 %v939_v35, %v878_v51  ;;  %v2174_v0 = vpop.permute.xlu0 %969  ;;  %v2176_v55 = vpop.permute.xlu1 %829  ;;  %v2195_v35 = vld [vmem:[#allocation8] sm:$0xff] }
 0x1fa   :  { %2720 = vst [vmem:[#allocation51_spill] sm:$0xff] %v2174_v0  ;;  %v980_v21 = vsel %vm977_vm9, %v966_v16, %v2174_v0 }
 0x1fb   :  { %v1010_v2 = vmul.f32 %v999_v31, %v980_v21 }
 0x1fd   :  { %v2181_v17 = vadd.f32 %v1010_v2, %v949_v48  ;;  %v2183_v27 = vpop.permute.xlu0 %643  ;;  %v2185_v25 = vpop.permute.xlu1 %900  ;;  %v731_v48 = vmul.f32 %v715_v61, %v1662_v19 }
 0x1fe   :  { %2722 = vst [vmem:[#allocation53_spill] sm:$0xff] %v2185_v25  ;;  %v659_v54 = vsel %vm653_vm5, %v1895_v1, %v2183_v27  ;;  %v839_v1 = vsel %vm835_vm7, %v826_v9, %v2176_v55  ;;  %v910_v52 = vsel %vm906_vm8, %v897_v63, %v2185_v25  ;;  %v2379_v25 = vld [vmem:[#allocation8 + $0x40] sm:$0x7] }
 0x1ff   :  { %2721 = vst [vmem:[#allocation52_spill] sm:$0xff] %v2181_v17  ;;  %v691_v51 = vmul.f32 %v2040_v43, %v659_v54  ;;  %v802_v17 = vmul.f32 %v786_v53, %v768_v11  ;;  %v2206_v54 = vld [vmem:[#allocation8 + $0x20] sm:$0xff]  ;;  %v873_v61 = vmul.f32 %v857_v49, %v839_v1  ;;  %v342_v53 = vld [vmem:[#allocation8 + $0x28] sm:$0x7]  ;;  %v944_v49 = vmul.f32 %v928_v39, %v910_v52 }
 0x201   :  { %v701_v16 = vadd.f32 %v691_v51, %v2110_v14  ;;  %v2199_v21 = vpop.permute.xlu1 %971  ;;  %v2201_v2 = vpop.permute.xlu0 %361  ;;  %v707_v14 = vrot.slane %v2195_v35, %v1847_v4 }
 0x202   :  { %2723 = vst [vmem:[#allocation54_spill] sm:$0xff] %v2199_v21  ;;  %v373_v19 = vsel %vm369_vm1, %v2024_v23, %v2201_v2  ;;  %v981_v11 = vsel %vm977_vm9, %v968_v6, %v2199_v21  ;;  %v723_v23 = vrot.slane %v2206_v54, %v1847_v4  ;;  %v2235_v6 = vrot.slane %v2195_v35, %v2069_v28 }
 0x203   :  { %v741_v43 = vadd.f32 %v731_v48, %v701_v16  ;;  %v719_v16 = vrot.slane %v1958_v57, %v1847_v4  ;;  %v2241_v21 = vmul.f32 %v707_v14, %v1598_v15  ;;  %v2244_v4 = vrot.slane %v342_v53, %v1772_v44 }
 0x204   :  { %v1015_v39 = vmul.f32 %v999_v31, %v981_v11  ;;  %v771_v31 = vsel %vm764_vm6, %v1722_v29, %v1724_v30 }
 0x205   :  { %v812_v51 = vadd.f32 %v802_v17, %v741_v43  ;;  %v435_v0 = vpop.permute.xlu0 %434  ;;  %v439_v9 = vpop.permute.xlu1 %438  ;;  %v408_v17 = vmul.f32 %v1969_v8, %v373_v19  ;;  %v2231_v43 = vrot.slane %v2195_v35, %v2047_v46  ;;  %v2256_v15 = vmul.f32 %v719_v16, %v1640_v18  ;;  %v2727_v18 = vld [vmem:[#allocation27_spill] sm:$0xff] }
 0x206   :  { %v444_v63 = vsel %vm440_vm3, %v2049_v56, %v435_v0  ;;  %v2238_v56 = vmul.f32 %v707_v14, %v1558_v13  ;;  %v2253_v13 = vmul.f32 %v719_v16, %v1708_v26  ;;  %v2274_v16 = vrot.slane %v342_v53, %v2727_v18 }
 0x207   :  { %v883_v48 = vadd.f32 %v873_v61, %v812_v51  ;;  %v479_v1 = vmul.f32 %v1981_v58, %v444_v63  ;;  %v2247_v61 = vrot.slane %v342_v53, %v1775_v45  ;;  %v2266_v63 = vmul.f32 %v1750_v37, %v723_v23 }
 0x208   :  { %2724 = vst [vmem:[#allocation55_spill] sm:$0xff] %v2238_v56  ;;  %2728 = vst [vmem:[#allocation27_spill] sm:$0xff] %v2274_v16  ;;  %v2281_v30 = vrot.slane %v2091_v50, %v2727_v18  ;;  %v2285_v37 = vrot.slane %v2195_v35, %v1775_v45  ;;  %v2292_v53 = vmul.f32 %v2231_v43, %v771_v31  ;;  %v2740_v56 = vld [vmem:[#allocation31_spill] sm:$0xff] }
 0x209   :  { %v954_v8 = vadd.f32 %v944_v49, %v883_v48  ;;  %v489_v58 = vadd.f32 %v479_v1, %v408_v17  ;;  %v506_v52 = vpop.permute.xlu0 %505  ;;  %v510_v19 = vpop.permute.xlu1 %509  ;;  %v2729_v48 = vld [vmem:[#allocation34_spill] sm:$0xff] }
 0x20a   :  { %v515_v51 = vsel %vm511_vm2, %v2075_v33, %v506_v52  ;;  %v2726_v33 = vld [vmem:[#allocation22_spill] sm:$0xff]  ;;  %v2277_v49 = vmul.f32 %v723_v23, %v2729_v48  ;;  %2731 = vst [vmem:[#allocation57_spill] sm:$0xff] %v2292_v53  ;;  %v2732_v23 = vld [vmem:[#allocation23_spill] sm:$0xff] }
 0x20b   :  { %v2262_v14 = vadd.f32 %v1015_v39, %v954_v8  ;;  %v550_v11 = vmul.f32 %v2000_v59, %v515_v51  ;;  %v842_v26 = vsel %vm835_vm7, %v2726_v33, %v1732_v32  ;;  %v2289_v59 = vrot.slane %v2206_v54, %v1775_v45 }
 0x20c   :  { %2730 = vst [vmem:[#allocation34_spill] sm:$0xff] %v2277_v49  ;;  %v913_v50 = vsel %vm906_vm8, %v2732_v23, %v1740_v34  ;;  %v2300_v8 = vrot.slane %v2195_v35, %v2727_v18  ;;  %v2310_v51 = vrot.slane %v2206_v54, %v2727_v18  ;;  %v2315_v34 = vrot.slane %v2195_v35, %v1772_v44 }
 0x20d   :  { %2725 = vst [vmem:[#allocation56_spill] sm:$0xff] %v2262_v14  ;;  %v560_v32 = vadd.f32 %v550_v11, %v489_v58  ;;  %v577_v17 = vpop.permute.xlu0 %576  ;;  %v581_v1 = vpop.permute.xlu1 %580  ;;  %v2306_v58 = vmul.f32 %v2235_v6, %v842_v26  ;;  %v2735_v11 = vld [vmem:[#allocation28_spill] sm:$0xff]  ;;  %v2736_v14 = vld [vmem:[#allocation29_spill] sm:$0xff] }
 0x20e   :  { %v586_v39 = vsel %vm582_vm4, %v2096_v60, %v577_v17  ;;  %2734 = vst [vmem:[#allocation59_spill] sm:$0xff] %v2310_v51  ;;  %v450_v48 = vsel %vm440_vm3, %v439_v9, %v2735_v11  ;;  %v2322_v60 = vrot.slane %v2195_v35, %v2736_v14  ;;  %v2326_v26 = vrot.slane %v2206_v54, %v2736_v14  ;;  %v2738_v11 = vld [vmem:[#allocation30_spill] sm:$0xff]  ;;  %v2739_v14 = vld [vmem:[#allocation24_spill] sm:$0xff] }
 0x20f   :  { %2733 = vst [vmem:[#allocation58_spill] sm:$0xff] %v2306_v58  ;;  %v621_v31 = vmul.f32 %v2022_v40, %v586_v39  ;;  %v2330_v58 = vrot.slane %v2206_v54, %v1772_v44  ;;  %v2333_v40 = vmul.f32 %v2244_v4, %v913_v50  ;;  %v442_v39 = vsel %vm440_vm3, %v435_v0, %v439_v9  ;;  %v2741_v9 = vld [vmem:[#allocation33_spill] sm:$0xff] }
 0x210   :  { %v2339_v53 = vrot.slane %v2195_v35, %v2738_v11  ;;  %v984_v49 = vsel %vm977_vm9, %v2739_v14, %v1748_v36  ;;  %v521_v50 = vsel %vm511_vm2, %v510_v19, %v2740_v56  ;;  %v2359_v36 = vrot.slane %v2206_v54, %v2738_v11  ;;  %v2742_v56 = vld [vmem:[#allocation26_spill] sm:$0xff] }
 0x211   :  { %2737 = vst [vmem:[#allocation28_spill] sm:$0xff] %v2333_v40  ;;  %v631_v23 = vadd.f32 %v621_v31, %v560_v32  ;;  %v652_v33 = vpop.permute.xlu1 %651  ;;  %v366_v5 = vpop.permute.xlu0 %365  ;;  %v476_v32 = vmul.f32 %v2285_v37, %v450_v48  ;;  %v513_v31 = vsel %vm511_vm2, %v506_v52, %v510_v19  ;;  %v2743_v40 = vld [vmem:[#allocation25_spill] sm:$0xff]  ;;  %v480_v29 = vmul.f32 %v2289_v59, %v442_v39 }
 0x212   :  { %v371_v0 = vsel %vm369_vm1, %v2201_v2, %v366_v5  ;;  %v379_v35 = vsel %vm369_vm1, %v366_v5, %v2741_v9  ;;  %v1055_v2 = vsel %vm1048_vm10, %v2743_v40, %v2742_v56  ;;  %v592_v5 = vsel %vm582_vm4, %v581_v1, %v2744_v24 }
 0x213   :  { %v405_v14 = vmul.f32 %v2315_v34, %v379_v35  ;;  %v409_v48 = vmul.f32 %v2330_v58, %v371_v0  ;;  %v2372_v52 = vmul.f32 %v2247_v61, %v984_v49  ;;  %v547_v19 = vmul.f32 %v2300_v8, %v521_v50 }
 0x214   :  { %v2377_v9 = vrot.slane %v1958_v57, %v2047_v46  ;;  %v551_v39 = vmul.f32 %v2310_v51, %v513_v31  ;;  %v663_v24 = vsel %vm653_vm5, %v652_v33, %v1865_v12  ;;  %v2387_v49 = vrot.slane %v2206_v54, %v2047_v46 }
 0x215   :  { %2745 = vst [vmem:[#allocation29_spill] sm:$0xff] %v2372_v52  ;;  %v486_v11 = vadd.f32 %v476_v32, %v405_v14  ;;  %v763_v35 = vpop.permute.xlu0 %762  ;;  %v364_v40 = vpop.permute.xlu1 %363  ;;  %v490_v0 = vadd.f32 %v480_v29, %v409_v48  ;;  %v2389_v14 = vld [vmem:[#allocation8 + $0x48] sm:$0x7]  ;;  %v2392_v50 = vmul.f32 %v2274_v16, %v1055_v2  ;;  %v584_v32 = vsel %vm582_vm4, %v577_v17, %v581_v1 }
 0x216   :  { %v618_v52 = vmul.f32 %v2322_v60, %v592_v5  ;;  %v2399_v12 = vrot.slane %v1958_v57, %v2069_v28  ;;  %v2403_v29 = vrot.slane %v2206_v54, %v2069_v28  ;;  %v2407_v46 = vrot.slane %v2379_v25, %v1772_v44  ;;  %v2747_v28 = vld [vmem:[#allocation35_spill] sm:$0xff] }
 0x217   :  { %2746 = vst [vmem:[#allocation30_spill] sm:$0xff] %v2392_v50  ;;  %v557_v31 = vadd.f32 %v547_v19, %v486_v11  ;;  %v561_v51 = vadd.f32 %v551_v39, %v490_v0  ;;  %v657_v17 = vsel %vm653_vm5, %v2183_v27, %v2158_v38  ;;  %v689_v1 = vmul.f32 %v2339_v53, %v663_v24  ;;  %v2749_v11 = vld [vmem:[#allocation36_spill] sm:$0xff]  ;;  %v2750_v39 = vld [vmem:[#allocation37_spill] sm:$0xff]  ;;  %v2751_v0 = vld [vmem:[#allocation38_spill] sm:$0xff] }
 0x218   :  { %v2416_v57 = vrot.slane %v2389_v14, %v1772_v44  ;;  %v772_v54 = vsel %vm764_vm6, %v2747_v28, %v1903_v7  ;;  %v1053_v19 = vsel %vm1048_vm10, %v2742_v56, %v2131_v42  ;;  %v622_v27 = vmul.f32 %v2326_v26, %v584_v32 }
 0x219   :  { %v628_v2 = vadd.f32 %v618_v52, %v557_v31  ;;  %v834_v5 = vpop.permute.xlu0 %833  ;;  %v437_v48 = vpop.permute.xlu1 %436  ;;  %v2429_v52 = vrot.slane %v2379_v25, %v1775_v45  ;;  %v843_v44 = vsel %vm835_vm7, %v2749_v11, %v1913_v10  ;;  %v914_v7 = vsel %vm906_vm8, %v2750_v39, %v1935_v62 }
 0x21a   :  { %v655_v56 = vsel %vm653_vm5, %v2158_v38, %v652_v33  ;;  %v985_v32 = vsel %vm977_vm9, %v2751_v0, %v1946_v22  ;;  %v692_v31 = vmul.f32 %v2044_v3, %v657_v17  ;;  %v632_v50 = vadd.f32 %v622_v27, %v561_v51  ;;  %v2752_v17 = vld [vmem:[#allocation16_spill] sm:$0xff] }
 0x21b   :  { %2748 = vst [vmem:[#allocation31_spill] sm:$0xff] %v2429_v52  ;;  %v699_v24 = vadd.f32 %v689_v1, %v628_v2  ;;  %v2449_v10 = vrot.slane %v2389_v14, %v1775_v45  ;;  %v800_v42 = vmul.f32 %v2231_v43, %v772_v54  ;;  %v1080_v62 = vmul.f32 %v2281_v30, %v1053_v19  ;;  %v2753_v2 = vld [vmem:[#allocation44_spill] sm:$0xff] }
 0x21c   :  { %v2458_v33 = vrot.slane %v2152_v47, %v2727_v18  ;;  %v871_v22 = vmul.f32 %v2235_v6, %v843_v44  ;;  %v942_v3 = vmul.f32 %v2244_v4, %v914_v7  ;;  %v702_v51 = vadd.f32 %v692_v31, %v631_v23  ;;  %v2754_v4 = vld [vmem:[#allocation40_spill] sm:$0xff]  ;;  %v2755_v23 = vld [vmem:[#allocation45_spill] sm:$0xff]  ;;  %v2756_v44 = vld [vmem:[#allocation39_spill] sm:$0xff] }
 0x21d   :  { %v905_v52 = vpop.permute.xlu0 %904  ;;  %v2453_v16 = vpop.permute.xlu1 %1030  ;;  %v739_v38 = vadd.f32 %v2241_v21, %v699_v24  ;;  %v693_v45 = vmul.f32 %v2359_v36, %v655_v56  ;;  %v1013_v43 = vmul.f32 %v2247_v61, %v985_v32  ;;  %v449_v1 = vsel %vm440_vm3, %v437_v48, %v2752_v17  ;;  %v2759_v32 = vld [vmem:[#allocation18_spill] sm:$0xff] }
 0x21e   :  { %v737_v21 = vadd.f32 %v2256_v15, %v2753_v2  ;;  %v766_v47 = vsel %vm764_vm6, %v2167_v20, %v763_v35  ;;  %v774_v6 = vsel %vm764_vm6, %v763_v35, %v2747_v28  ;;  %v441_v61 = vsel %vm440_vm3, %v2754_v4, %v437_v48  ;;  %v2757_v15 = vld [vmem:[#allocation17_spill] sm:$0xff]  ;;  %v2760_v2 = vld [vmem:[#allocation59_spill] sm:$0xff] }
 0x21f   :  { %v810_v54 = vadd.f32 %v800_v42, %v739_v38  ;;  %v703_v19 = vadd.f32 %v693_v45, %v632_v50  ;;  %v2479_v27 = vadd.f32 %v1080_v62, %v2755_v23  ;;  %v370_v42 = vsel %vm369_vm1, %v2756_v44, %v364_v40  ;;  %v2758_v48 = vld [vmem:[#allocation41_spill] sm:$0xff] }
 0x220   :  { %v378_v50 = vsel %vm369_vm1, %v364_v40, %v2757_v15  ;;  %v742_v35 = vadd.f32 %v2253_v13, %v702_v51  ;;  %v471_v28 = vmul.f32 %v2285_v37, %v449_v1  ;;  %v803_v62 = vmul.f32 %v2377_v9, %v766_v47  ;;  %v2764_v15 = vld [vmem:[#allocation53_spill] sm:$0xff] }
 0x221   :  { %v508_v20 = vpop.permute.xlu0 %507  ;;  %v2487_v7 = vpop.permute.xlu1 %1038  ;;  %v881_v56 = vadd.f32 %v871_v22, %v810_v54  ;;  %v804_v40 = vmul.f32 %v2387_v49, %v774_v6  ;;  %v475_v38 = vmul.f32 %v2289_v59, %v441_v61  ;;  %v743_v22 = vadd.f32 %v2266_v63, %v703_v19 }
 0x222   :  { %v512_v24 = vsel %vm511_vm2, %v2758_v48, %v508_v20  ;;  %v520_v31 = vsel %vm511_vm2, %v508_v20, %v2759_v32  ;;  %v400_v13 = vmul.f32 %v2315_v34, %v378_v50  ;;  %v404_v37 = vmul.f32 %v2330_v58, %v370_v42  ;;  %v2761_v34 = vld [vmem:[#allocation42_spill] sm:$0xff]  ;;  %v2766_v32 = vld [vmem:[#allocation20_spill] sm:$0xff] }
 0x223   :  { %v952_v45 = vadd.f32 %v942_v3, %v881_v56  ;;  %v542_v51 = vmul.f32 %v2300_v8, %v520_v31  ;;  %v837_v17 = vsel %vm835_vm7, %v2176_v55, %v834_v5  ;;  %v845_v1 = vsel %vm835_vm7, %v834_v5, %v2749_v11  ;;  %v2762_v8 = vld [vmem:[#allocation19_spill] sm:$0xff] }
 0x224   :  { %v546_v54 = vmul.f32 %v2760_v2, %v512_v24  ;;  %v481_v63 = vadd.f32 %v471_v28, %v400_v13  ;;  %v2763_v55 = vld [vmem:[#allocation47_spill] sm:$0xff]  ;;  %v485_v5 = vadd.f32 %v475_v38, %v404_v37  ;;  %v814_v61 = vadd.f32 %v804_v40, %v743_v22  ;;  %v2767_v40 = vld [vmem:[#allocation49_spill] sm:$0xff] }
 0x225   :  { %v579_v59 = vpop.permute.xlu0 %578  ;;  %v761_v3 = vpop.permute.xlu1 %760  ;;  %v2511_v47 = vadd.f32 %v1013_v43, %v952_v45  ;;  %v874_v23 = vmul.f32 %v2399_v12, %v837_v17  ;;  %v875_v44 = vmul.f32 %v2403_v29, %v845_v1  ;;  %v908_v50 = vsel %vm906_vm8, %v2764_v15, %v905_v52 }
 0x226   :  { %v583_v58 = vsel %vm582_vm4, %v2761_v34, %v579_v59  ;;  %v591_v19 = vsel %vm582_vm4, %v579_v59, %v2762_v8  ;;  %v765_v6 = vsel %vm764_vm6, %v2763_v55, %v761_v3  ;;  %v552_v42 = vadd.f32 %v542_v51, %v481_v63  ;;  %v2768_v51 = vld [vmem:[#allocation21_spill] sm:$0xff]  ;;  %v2769_v34 = vld [vmem:[#allocation55_spill] sm:$0xff]  ;;  %v2770_v8 = vld [vmem:[#allocation34_spill] sm:$0xff] }
 0x227   :  { %v613_v11 = vmul.f32 %v2322_v60, %v591_v19  ;;  %v617_v4 = vmul.f32 %v2326_v26, %v583_v58  ;;  %v798_v43 = vmul.f32 %v2377_v9, %v765_v6  ;;  %v916_v20 = vsel %vm906_vm8, %v905_v52, %v2750_v39  ;;  %v2765_v9 = vld [vmem:[#allocation43_spill] sm:$0xff]  ;;  %v2771_v55 = vld [vmem:[#allocation50_spill] sm:$0xff] }
 0x228   :  { %v556_v56 = vadd.f32 %v546_v54, %v485_v5  ;;  %v813_v22 = vadd.f32 %v803_v62, %v742_v35  ;;  %v885_v13 = vadd.f32 %v875_v44, %v814_v61  ;;  %v945_v37 = vmul.f32 %v2407_v46, %v908_v50  ;;  %v2775_v44 = vld [vmem:[#allocation23_spill] sm:$0xff] }
 0x229   :  { %v808_v60 = vadd.f32 %v798_v43, %v737_v21  ;;  %v650_v28 = vpop.permute.xlu0 %649  ;;  %v832_v26 = vpop.permute.xlu1 %831  ;;  %v623_v48 = vadd.f32 %v613_v11, %v552_v42  ;;  %v773_v17 = vsel %vm764_vm6, %v761_v3, %v2768_v51  ;;  %v946_v35 = vmul.f32 %v2416_v57, %v916_v20  ;;  %v2772_v11 = vld [vmem:[#allocation22_spill] sm:$0xff] }
 0x22a   :  { %v654_v24 = vsel %vm653_vm5, %v2765_v9, %v650_v28  ;;  %v662_v31 = vsel %vm653_vm5, %v650_v28, %v2766_v32  ;;  %v836_v38 = vsel %vm835_vm7, %v2767_v40, %v832_v26  ;;  %v627_v45 = vadd.f32 %v617_v4, %v556_v56  ;;  %v2773_v43 = vld [vmem:[#allocation54_spill] sm:$0xff]  ;;  %v2776_v28 = vld [vmem:[#allocation51_spill] sm:$0xff] }
 0x22b   :  { %v684_v52 = vmul.f32 %v2339_v53, %v662_v31  ;;  %v688_v39 = vmul.f32 %v2359_v36, %v654_v24  ;;  %v869_v21 = vmul.f32 %v2399_v12, %v836_v38  ;;  %v2551_v53 = vrot.slane %v2379_v25, %v2727_v18  ;;  %v2778_v24 = vld [vmem:[#allocation27_spill] sm:$0xff] }
 0x22c   :  { %v2555_v36 = vmul.f32 %v2479_v27, %v2479_v27  ;;  %v884_v12 = vadd.f32 %v874_v23, %v813_v22  ;;  %v2560_v62 = vrot.slane %v2389_v14, %v2727_v18  ;;  %v799_v3 = vmul.f32 %v2387_v49, %v773_v17  ;;  %v2774_v14 = vld [vmem:[#allocation57_spill] sm:$0xff]  ;;  %v2779_v31 = vld [vmem:[#allocation31_spill] sm:$0xff] }
 0x22d   :  { %v694_v1 = vadd.f32 %v684_v52, %v623_v48  ;;  %v698_v2 = vadd.f32 %v688_v39, %v627_v45  ;;  %v879_v54 = vadd.f32 %v869_v21, %v808_v60  ;;  %v976_v59 = vpop.permute.xlu0 %975  ;;  %v903_v63 = vpop.permute.xlu1 %902  ;;  %v956_v5 = vadd.f32 %v946_v35, %v885_v13  ;;  %v2780_v39 = vld [vmem:[#allocation28_spill] sm:$0xff] }
 0x22e   :  { %v907_v25 = vsel %vm906_vm8, %v2771_v55, %v903_v63  ;;  %v955_v6 = vadd.f32 %v945_v37, %v884_v12  ;;  %v844_v4 = vsel %vm835_vm7, %v832_v26, %v2772_v11  ;;  %v979_v18 = vsel %vm977_vm9, %v2773_v43, %v976_v59  ;;  %v2777_v26 = vld [vmem:[#allocation58_spill] sm:$0xff]  ;;  %v2781_v37 = vld [vmem:[#allocation48_spill] sm:$0xff] }
 0x22f   :  { %v734_v58 = vadd.f32 %v2769_v34, %v694_v1  ;;  %v738_v19 = vadd.f32 %v2770_v8, %v698_v2  ;;  %v987_v23 = vsel %vm977_vm9, %v976_v59, %v2751_v0  ;;  %v915_v42 = vsel %vm906_vm8, %v903_v63, %v2775_v44  ;;  %v2782_v2 = vld [vmem:[#allocation24_spill] sm:$0xff]  ;;  %v2783_v59 = vld [vmem:[#allocation46_spill] sm:$0xff] }
 0x230   :  { %v940_v20 = vmul.f32 %v2407_v46, %v907_v25  ;;  %v870_v9 = vmul.f32 %v2403_v29, %v844_v4  ;;  %v1016_v40 = vmul.f32 %v2779_v31, %v979_v18  ;;  %v1017_v38 = vmul.f32 %v2449_v10, %v987_v23  ;;  %v2785_v4 = vld [vmem:[#allocation30_spill] sm:$0xff]  ;;  %v2786_v44 = vld [vmem:[#allocation52_spill] sm:$0xff] }
 0x231   :  { %v805_v49 = vadd.f32 %v2774_v14, %v734_v58  ;;  %v809_v61 = vadd.f32 %v799_v3, %v738_v19  ;;  %v1035_v15 = vpop.permute.xlu0 %1034  ;;  %v974_v50 = vpop.permute.xlu1 %973  ;;  %v941_v45 = vmul.f32 %v2416_v57, %v915_v42 }
 0x232   :  { %v1054_v56 = vsel %vm1048_vm10, %v1035_v15, %v2487_v7  ;;  %v1056_v60 = vsel %vm1048_vm10, %v2453_v16, %v1035_v15  ;;  %v978_v0 = vsel %vm977_vm9, %v2776_v28, %v974_v50  ;;  %v950_v1 = vadd.f32 %v940_v20, %v879_v54 }
 0x233   :  { %v876_v48 = vadd.f32 %v2777_v26, %v805_v49  ;;  %v1084_v32 = vmul.f32 %v2778_v24, %v1056_v60  ;;  %v1085_v46 = vmul.f32 %v2281_v30, %v1054_v56  ;;  %v1011_v52 = vmul.f32 %v2779_v31, %v978_v0  ;;  %v2788_v26 = vld [vmem:[#allocation56_spill] sm:$0xff] }
 0x234   :  { %v880_v22 = vadd.f32 %v870_v9, %v809_v61  ;;  %v986_v30 = vsel %vm977_vm9, %v974_v50, %v2782_v2  ;;  %v1026_v58 = vadd.f32 %v1016_v40, %v955_v6  ;;  %v1027_v55 = vadd.f32 %v1017_v38, %v956_v5  ;;  %v2787_v5 = vld [vmem:[#allocation25_spill] sm:$0xff] }
 0x235   :  { %v947_v21 = vadd.f32 %v2780_v39, %v876_v48  ;;  %v1094_v13 = vadd.f32 %v1084_v32, %v2511_v47  ;;  %v1095_v51 = vadd.f32 %v1085_v46, %v2781_v37  ;;  %v1041_v29 = vpop.permute.xlu0 %1040  ;;  %v1045_v17 = vpop.permute.xlu1 %1044  ;;  %v2784_v47 = vld [vmem:[#allocation29_spill] sm:$0xff]  ;;  %v1021_v8 = vadd.f32 %v1011_v52, %v950_v1 }
 0x236   :  { %v1051_v57 = vsel %vm1048_vm10, %v2783_v59, %v1041_v29  ;;  %v1049_v63 = vsel %vm1048_vm10, %v1041_v29, %v1045_v17  ;;  %v951_v25 = vadd.f32 %v941_v45, %v880_v22  ;;  %v1012_v49 = vmul.f32 %v2449_v10, %v986_v30 }
 0x237   :  { %v1100_v12 = vmul.f32 %v1094_v13, %v1094_v13  ;;  %v1102_v35 = vmul.f32 %v1095_v51, %v1095_v51  ;;  %v1104_v3 = vmul.f32 %v1095_v51, %v1094_v13  ;;  %v1018_v34 = vadd.f32 %v2784_v47, %v947_v21 }
 0x238   :  { %v1081_v54 = vmul.f32 %v2458_v33, %v1051_v57  ;;  %v1082_v19 = vmul.f32 %v2551_v53, %v1049_v63  ;;  %v1057_v50 = vsel %vm1048_vm10, %v1045_v17, %v2787_v5  ;;  %v1022_v24 = vadd.f32 %v1012_v49, %v951_v25 }
 0x239   :  { %v1122_v11 = vadd.f32 %v1102_v35, %v1100_v12  ;;  %v1089_v43 = vadd.f32 %v2785_v4, %v1018_v34  ;;  %v1043_v18 = vpop.permute.xlu0 %1042  ;;  %v1047_v14 = vpop.permute.xlu1 %1046  ;;  %v1112_v45 = vmul.f32 2.0, %v1104_v3 }
 0x23a   :  { %v1092_v61 = vadd.f32 %v1082_v19, %v1021_v8  ;;  %v1052_v23 = vsel %vm1048_vm10, %v2487_v7, %v1043_v18  ;;  %v1050_v6 = vsel %vm1048_vm10, %v1043_v18, %v1047_v14  ;;  %v1091_v42 = vadd.f32 %v1081_v54, %v2786_v44 }
 0x23b   :  { %v1099_v15 = vmul.f32 %v1089_v43, %v1089_v43  ;;  %v1086_v20 = vmul.f32 %v2458_v33, %v1052_v23  ;;  %v1058_v10 = vsel %vm1048_vm10, %v1047_v14, %v2453_v16  ;;  %v1087_v7 = vmul.f32 %v2551_v53, %v1050_v6 }
 0x23c   :  { %v1107_v56 = vsub.f32 %v1092_v61, %v2555_v36  ;;  %v1103_v60 = vmul.f32 %v2479_v27, %v1089_v43  ;;  %v1088_v9 = vmul.f32 %v2560_v62, %v1058_v10  ;;  %v1083_v33 = vmul.f32 %v2560_v62, %v1057_v50 }
 0x23d   :  { %v1105_v28 = vsub.f32 %v1091_v42, %v1099_v15  ;;  %v1121_v0 = vadd.f32 %v2555_v36, %v1099_v15  ;;  %v1096_v48 = vadd.f32 %v1086_v20, %v2788_v26  ;;  %v1097_v32 = vadd.f32 %v1087_v7, %v1026_v58 }
 0x23e   :  { %v1098_v40 = vadd.f32 %v1088_v9, %v1027_v55  ;;  %v1093_v52 = vadd.f32 %v1083_v33, %v1022_v24  ;;  %v1124_v21 = vadd.f32 6.5025, %v1122_v11  ;;  %v1114_v51 = vadd.f32 6.5025, %v1112_v45 }
 0x23f   :  { %v1125_v46 = vadd.f32 %v1107_v56, %v1105_v28  ;;  %v1106_v31 = vsub.f32 %v1096_v48, %v1100_v12  ;;  %v1108_v41 = vsub.f32 %v1097_v32, %v1102_v35  ;;  %v1123_v16 = vadd.f32 6.5025, %v1121_v0 }
 0x240   :  { %v1110_v53 = vsub.f32 %v1098_v40, %v1104_v3  ;;  %v1109_v37 = vsub.f32 %v1093_v52, %v1103_v60  ;;  %v1111_v1 = vmul.f32 2.0, %v1103_v60 }
 0x241   :  { %v1127_v38 = vadd.f32 58.5225, %v1125_v46  ;;  %v1126_v27 = vadd.f32 %v1108_v41, %v1106_v31 }
 0x242   :  { %v1116_v36 = vmul.f32 2.0, %v1110_v53  ;;  %v1115_v17 = vmul.f32 2.0, %v1109_v37  ;;  %v1113_v30 = vadd.f32 6.5025, %v1111_v1 }
 0x243   :  { %v1129_v39 = vmul.f32 %v1127_v38, %v1123_v16  ;;  %v1128_v22 = vadd.f32 58.5225, %v1126_v27 }
 0x244   :  { %v1118_v13 = vadd.f32 58.5225, %v1116_v36  ;;  %v1117_v2 = vadd.f32 58.5225, %v1115_v17 }
 0x245   :  { %1342 = vrcp.f32 %v1129_v39  ;;  %v1130_v29 = vmul.f32 %v1128_v22, %v1124_v21 }
 0x246   :  { %v1120_v62 = vmul.f32 %v1118_v13, %v1114_v51  ;;  %v1119_v59 = vmul.f32 %v1117_v2, %v1113_v30 }
 0x247   :  { %1344 = vrcp.f32 %v1130_v29 }
 0x252   :  { %v1343_v57 = vpop.eup %1342 }
 0x253   :  { %v1133_v63 = vmul.f32 %v1343_v57, %v1119_v59 }
 0x254   :  { %v1345_v12 = vpop.eup %1344 }
 0x255   :  { %1318 = vmatprep.mubr.f32.mxu1 %v1133_v63  ;;  %v1134_v35 = vmul.f32 %v1345_v12, %v1120_v62 }
 0x257   :  { %1319 = vmatmul.mubr.f32.vlgmr.msra.gmra.mxu1 %v1134_v35 }
 0x317   :  { %v1320_v3 = vpop.f32.mrf.mxu1 }
 0x319   :  { %v1217_v47 = vpop.f32.mrf.mxu1 }
 0x31a   :  { %v1226_v34 = vadd.f32 %v1320_v3, %v1217_v47 }
 0x31c   :  { %v1227_v58 = vrot.slane %v1226_v34, 4 }
 0x31e   :  { %v1228_v8 = vadd.f32 %v1227_v58, %v1226_v34 }
 0x320   :  { %v1229_v54 = vrot.slane %v1228_v8, 2 }
 0x322   :  { %v1230_v19 = vadd.f32 %v1229_v54, %v1228_v8 }
 0x324   :  { %v1231_v55 = vrot.slane %v1230_v19, 1 }
 0x326   :  { %v1232_v25 = vadd.f32 %v1231_v55, %v1230_v19 }
 0x328   :  { %1233 = vst [vmem:[#allocation11] sm:$0x1] %v1232_v25 }
 0x329   :  { %1457 = shalt.err (!%p1454_p1)
}
 0x32a   :  { %1243 = dma.vmem_to_hbm [thread:$0]  %s1241_s28, 16, %s2643_s5, [#allocation4]  }
 0x32b   :  { %1472 = dma.done.wait [#allocation4], 16  }
 0x32c   :  { %1473 = vsyncadd [#allocation4], 4294967280 }
 0x32d   :  { %1247 = vsyncpa [#allocation3], 1 }
 0x32e   :  { %1248 = vsyncpa [#allocation6], 1 }
 0x32f   :  { %1249 = vsyncpa [#allocation9], 1 }
 0x330   :  { %1250 = vsyncpa [#allocation4], 1 }

</bundles_post_ra>
